<compile_context>
chip_gen: v6e
topology: v6e:2x2x1
jax: 0.10.0
libtpu: 0.0.40
codegen_flags: <defaults>
</compile_context>

<pallas_src>
import math

import jax
import jax.numpy as jnp
import numpy as np
from jax import lax
from jax.experimental import pallas as pl
from jax.experimental.pallas import tpu as pltpu

# ---- small, deterministic hyper-parameters (TransformerModel(ntoken, ninp, nhead, nhid, nlayers)) ----
NTOKEN = 32     # vocab size
NINP = 32       # d_model
NHEAD = 4
NHID = 64       # feed-forward hidden dim
NLAYERS = 2
SEQ = 8
BATCH = 2
HEAD_DIM = NINP // NHEAD
LN_EPS = 1e-5
NEG_INF = -1e9  # numerically-safe "-inf" for the causal mask


def _layernorm(v, gamma, beta):
    mu = jnp.mean(v, axis=-1, keepdims=True)
    var = jnp.mean((v - mu) ** 2, axis=-1, keepdims=True)
    return (v - mu) * lax.rsqrt(var + LN_EPS) * gamma + beta


# ----------------------------- fused Pallas kernel (one grid step per batch element) -----------------------------

def model_kernel(src_ref, emb_ref, pe_ref, wqkv_ref, bqkv_ref, wo_ref, bo_ref,
                 w1_ref, b1_ref, w2_ref, b2_ref, ln_ref, dec_w_ref, dec_b_ref,
                 out_ref):
    """Whole TransformerModel forward for ONE batch element (everything VMEM-resident).

    Shapes:
      src_ref  [S, B]   i32 token ids          emb_ref [NTOKEN, D] f32 (pre-scaled by sqrt(ninp))
      pe_ref   [S, D]   f32 positional enc.
      wqkv_ref [L, 3H, D, Dh] bf16 (Q part pre-scaled by 1/sqrt(Dh))   bqkv_ref [L, 3H, 1, Dh] f32
      wo_ref   [L, H, Dh, D]  bf16             bo_ref  [L, 1, D]  f32
      w1_ref   [L, D, NHID]   bf16             b1_ref  [L, 1, NHID] f32
      w2_ref   [L, NHID, D]   bf16             b2_ref  [L, 1, D]  f32
      ln_ref   [L, 4, D] f32 (gamma1, beta1, gamma2, beta2)
      dec_w_ref [D, NTOKEN] bf16               dec_b_ref [1, NTOKEN] f32
      out_ref  [1, S, NTOKEN] f32 (this batch's block)
    """
    f32, bf16 = jnp.float32, jnp.bfloat16
    b = pl.program_id(0)
    H, S, D = NHEAD, SEQ, NINP

    # ---- fused embedding lookup (one-hot matmul) + positional encoding ----
    src_all = src_ref[...]                                                   # [S, B] i32
    col = lax.broadcasted_iota(jnp.int32, (S, BATCH), 1)
    ids = jnp.sum(jnp.where(col == b, src_all, 0), axis=1, keepdims=True)    # [S, 1] (column b)
    onehot = (ids == lax.broadcasted_iota(jnp.int32, (S, NTOKEN), 1)).astype(f32)
    x = jnp.dot(onehot, emb_ref[...], preferred_element_type=f32) + pe_ref[...]   # [S, D] f32

    # ---- causal mask built in-kernel (two iota compares, no HBM mask) ----
    qi = lax.broadcasted_iota(jnp.int32, (S, S), 0)
    kj = lax.broadcasted_iota(jnp.int32, (S, S), 1)
    mask = jnp.where(kj <= qi, 0.0, NEG_INF).astype(f32)                     # [S, S]

    for l in range(NLAYERS):                                                 # static unroll
        ln_l = ln_ref[l]
        x_bf = x.astype(bf16)

        # --- head-batched QKV projection (weights pre-split per (q/k/v, head)) ---
        xg = jnp.broadcast_to(x_bf[None], (3 * H, S, D))
        qkv = jnp.einsum('gsd,gde->gse', xg, wqkv_ref[l],
                         preferred_element_type=f32) + bqkv_ref[l]           # [3H, S, Dh] f32
        qkv = qkv.astype(bf16)                                               # single bf16 cast
        q, k, v = qkv[:H], qkv[H:2 * H], qkv[2 * H:]                         # [H, S, Dh] each

        # --- all heads at once: scores, ONE softmax pass, context ---
        s = jnp.einsum('hqd,hkd->hqk', q, k,
                       preferred_element_type=f32) + mask[None]              # [H, S, S]
        m = jnp.max(s, axis=-1, keepdims=True)
        e = jnp.exp(s - m)
        p = e * pl.reciprocal(jnp.sum(e, axis=-1, keepdims=True), approx=True)
        ctx = jnp.einsum('hqk,hkd->hqd', p.astype(bf16), v,
                         preferred_element_type=f32)                         # [H, S, Dh]

        # --- output projection: per-head weight blocks, sum over heads (no lane concat) ---
        attn = jnp.sum(jnp.einsum('hsd,hde->hse', ctx.astype(bf16), wo_ref[l],
                                  preferred_element_type=f32), axis=0) + bo_ref[l]   # [S, D]

        # --- residual + LayerNorm1 (post-LN, f32) ---
        y = _layernorm(x + attn, ln_l[0:1, :], ln_l[1:2, :])

        # --- feed-forward (ReLU) + residual + LayerNorm2 ---
        h1 = jnp.maximum(jnp.dot(y.astype(bf16), w1_ref[l],
                                 preferred_element_type=f32) + b1_ref[l], 0.0)
        h2 = jnp.dot(h1.astype(bf16), w2_ref[l],
                     preferred_element_type=f32) + b2_ref[l]
        x = _layernorm(y + h2, ln_l[2:3, :], ln_l[3:4, :])

    # --- decoder Linear + log_softmax (NTOKEN == full last dim, no padding needed) ---
    logits = jnp.dot(x.astype(bf16), dec_w_ref[...],
                     preferred_element_type=f32) + dec_b_ref[...]            # [S, NTOKEN]
    mz = jnp.max(logits, axis=-1, keepdims=True)
    z = logits - mz
    lse = jnp.log(jnp.sum(jnp.exp(z), axis=-1, keepdims=True))
    out_ref[0] = (z - lse).astype(out_ref.dtype)


# ----------------------------- pallas_call wrapper -----------------------------

def positional_encoding(seq_len, d_model):
    pos = np.arange(seq_len, dtype=np.float32)[:, None]
    div = np.exp(np.arange(0, d_model, 2, dtype=np.float32) * (-math.log(10000.0) / d_model))
    pe = np.zeros((seq_len, d_model), dtype=np.float32)
    pe[:, 0::2] = np.sin(pos * div)
    pe[:, 1::2] = np.cos(pos * div)
    return jnp.asarray(pe)


def transformer_forward(src, kp):
    """src: [S, B] int32 token ids (same convention as the PyTorch module). Returns [S, B, NTOKEN]."""
    S, B = src.shape
    assert S == SEQ and B == BATCH, (S, B)

    const = lambda n: (lambda b: (0,) * n)   # weights: same block for every grid step (stay resident)

    flops = 2 * BATCH * (SEQ * NTOKEN * NINP
                         + NLAYERS * (3 * NINP * SEQ * NINP
                                      + 2 * NHEAD * SEQ * SEQ * HEAD_DIM
                                      + NHEAD * SEQ * HEAD_DIM * NINP
                                      + 2 * SEQ * NINP * NHID)
                         + SEQ * NINP * NTOKEN)
    transcendentals = BATCH * (NLAYERS * NHEAD * SEQ * SEQ + 2 * SEQ * NTOKEN)
    args = (src, kp["emb"], kp["pe"], kp["wqkv"], kp["bqkv"], kp["wo"], kp["bo"],
            kp["w1"], kp["b1"], kp["w2"], kp["b2"], kp["ln"], kp["dec_w"], kp["dec_b"])
    bytes_accessed = int(sum(int(np.prod(a.shape)) * a.dtype.itemsize for a in args)
                         + BATCH * SEQ * NTOKEN * 4)

    out = pl.pallas_call(
        model_kernel,
        out_shape=jax.ShapeDtypeStruct((B, S, NTOKEN), jnp.float32),
        grid=(B,),
        in_specs=[
            pl.BlockSpec((S, B), const(2)),                                    # src ids
            pl.BlockSpec((NTOKEN, NINP), const(2)),                            # emb (pre-scaled)
            pl.BlockSpec((S, NINP), const(2)),                                 # positional encoding
            pl.BlockSpec((NLAYERS, 3 * NHEAD, NINP, HEAD_DIM), const(4)),      # wqkv
            pl.BlockSpec((NLAYERS, 3 * NHEAD, 1, HEAD_DIM), const(4)),         # bqkv
            pl.BlockSpec((NLAYERS, NHEAD, HEAD_DIM, NINP), const(4)),          # wo (per-head blocks)
            pl.BlockSpec((NLAYERS, 1, NINP), const(3)),                        # bo
            pl.BlockSpec((NLAYERS, NINP, NHID), const(3)),                     # w1
            pl.BlockSpec((NLAYERS, 1, NHID), const(3)),                        # b1
            pl.BlockSpec((NLAYERS, NHID, NINP), const(3)),                     # w2
            pl.BlockSpec((NLAYERS, 1, NINP), const(3)),                        # b2
            pl.BlockSpec((NLAYERS, 4, NINP), const(3)),                        # layernorm params
            pl.BlockSpec((NINP, NTOKEN), const(2)),                            # decoder weight
            pl.BlockSpec((1, NTOKEN), const(2)),                               # decoder bias
        ],
        out_specs=pl.BlockSpec((1, S, NTOKEN), lambda b: (b, 0, 0)),
        compiler_params=pltpu.CompilerParams(
            dimension_semantics=("parallel",),
            vmem_limit_bytes=16 * 1024 * 1024),
        cost_estimate=pl.CostEstimate(flops=flops, transcendentals=transcendentals,
                                      bytes_accessed=bytes_accessed),
    )(*args)

    return jnp.transpose(out, (1, 0, 2))          # [S, B, NTOKEN]


# ----------------------------- parameter init (canonical, PyTorch-like) -----------------------------

def init_params(key):
    keys = jax.random.split(key, 2 + NLAYERS)
    uni = lambda k, shape: jax.random.uniform(k, shape, jnp.float32, -0.1, 0.1)

    emb = uni(keys[0], (NTOKEN, NINP))                 # nn.Embedding weight ~ U(-0.1, 0.1)
    dec_w = uni(keys[1], (NTOKEN, NINP))               # decoder.weight ~ U(-0.1, 0.1)
    dec_b = jnp.zeros((NTOKEN,), jnp.float32)

    layers = []
    for l in range(NLAYERS):
        lk = jax.random.split(keys[2 + l], 8)
        layers.append(dict(
            in_proj_w=uni(lk[0], (3 * NINP, NINP)),    # PyTorch in_proj_weight [3D, D]
            in_proj_b=uni(lk[1], (3 * NINP,)),
            out_proj_w=uni(lk[2], (NINP, NINP)),
            out_proj_b=uni(lk[3], (NINP,)),
            w1=uni(lk[4], (NHID, NINP)), b1=uni(lk[5], (NHID,)),
            w2=uni(lk[6], (NINP, NHID)), b2=uni(lk[7], (NINP,)),
            ln1_g=jnp.ones((NINP,), jnp.float32), ln1_b=jnp.zeros((NINP,), jnp.float32),
            ln2_g=jnp.ones((NINP,), jnp.float32), ln2_b=jnp.zeros((NINP,), jnp.float32),
        ))
    return dict(emb=emb, dec_w=dec_w, dec_b=dec_b, layers=layers)


def pack_params(p):
    """Canonical params -> kernel layout: per-layer stacks, head-blocked QKV/output-projection
    weights, bf16 MXU operands, sqrt(ninp) folded into emb, 1/sqrt(Dh) folded into Q."""
    scale = 1.0 / math.sqrt(HEAD_DIM)
    qscale = jnp.concatenate([jnp.full((NINP,), scale, jnp.float32),
                              jnp.ones((2 * NINP,), jnp.float32)])
    wqkv, bqkv, wo, bo, w1, b1, w2, b2, ln = ([] for _ in range(9))
    for lp in p["layers"]:
        w_t = lp["in_proj_w"].T * qscale[None, :]                              # [D, 3D]
        wqkv.append(w_t.reshape(NINP, 3 * NHEAD, HEAD_DIM)
                       .transpose(1, 0, 2).astype(jnp.bfloat16))               # [3H, D, Dh]
        bqkv.append((lp["in_proj_b"] * qscale)
                    .reshape(3 * NHEAD, HEAD_DIM)[:, None, :])                 # [3H, 1, Dh]
        wo.append(lp["out_proj_w"].T
                  .reshape(NHEAD, HEAD_DIM, NINP).astype(jnp.bfloat16))        # [H, Dh, D]
        bo.append(lp["out_proj_b"][None, :])
        w1.append(lp["w1"].T.astype(jnp.bfloat16)); b1.append(lp["b1"][None, :])
        w2.append(lp["w2"].T.astype(jnp.bfloat16)); b2.append(lp["b2"][None, :])
        ln.append(jnp.stack([lp["ln1_g"], lp["ln1_b"], lp["ln2_g"], lp["ln2_b"]], axis=0))

    return dict(
        emb=(p["emb"] * math.sqrt(NINP)).astype(jnp.float32),                  # sqrt(ninp) folded in
        pe=positional_encoding(SEQ, NINP),
        wqkv=jnp.stack(wqkv), bqkv=jnp.stack(bqkv),
        wo=jnp.stack(wo), bo=jnp.stack(bo),
        w1=jnp.stack(w1), b1=jnp.stack(b1),
        w2=jnp.stack(w2), b2=jnp.stack(b2),
        ln=jnp.stack(ln),
        dec_w=p["dec_w"].T.astype(jnp.bfloat16),                               # [D, NTOKEN]
        dec_b=p["dec_b"][None, :],
    )


# ----------------------------- pure-JAX reference (f32, canonical weights) -----------------------------

def reference_forward(src, params):
    S, B = src.shape
    x = params["emb"][src] * math.sqrt(NINP)
    x = x + positional_encoding(S, NINP)[:, None, :]
    x = jnp.transpose(x, (1, 0, 2)).reshape(B * S, NINP)
    i = np.arange(S)
    mask = jnp.asarray(np.where(i[None, :] <= i[:, None], 0.0, NEG_INF).astype(np.float32))
    for lp in params["layers"]:
        wq, wk, wv = jnp.split(lp["in_proj_w"], 3, axis=0)
        bq, bk, bv = jnp.split(lp["in_proj_b"], 3)
        rows = []
        for b in range(B):
            xb = x[b * S:(b + 1) * S]
            q = xb @ wq.T + bq
            k = xb @ wk.T + bk
            v = xb @ wv.T + bv
            heads = []
            for h in range(NHEAD):
                sl = slice(h * HEAD_DIM, (h + 1) * HEAD_DIM)
                s = (q[:, sl] @ k[:, sl].T) / math.sqrt(HEAD_DIM) + mask
                heads.append(jax.nn.softmax(s, axis=-1) @ v[:, sl])
            rows.append(jnp.concatenate(heads, axis=-1) @ lp["out_proj_w"].T + lp["out_proj_b"])
        attn = jnp.concatenate(rows, axis=0)
        y = _layernorm(x + attn, lp["ln1_g"][None, :], lp["ln1_b"][None, :])
        h1 = jax.nn.relu(y @ lp["w1"].T + lp["b1"])
        x = _layernorm(y + h1 @ lp["w2"].T + lp["b2"], lp["ln2_g"][None, :], lp["ln2_b"][None, :])
    logits = x @ params["dec_w"].T + params["dec_b"]
    out = jax.nn.log_softmax(logits, axis=-1)
    return out.reshape(B, S, NTOKEN).transpose(1, 0, 2)


# TODO(synk): dropout (p=0.1 pos-encoder, p=0.5 encoder layers) is modeled in eval mode (identity);
# training-mode stochastic dropout is not implemented in the kernel.

if __name__ == "__main__":
    key = jax.random.PRNGKey(0)
    pkey, skey = jax.random.split(key)
    params = init_params(pkey)
    kparams = pack_params(params)
    src = jax.random.randint(skey, (SEQ, BATCH), 0, NTOKEN, dtype=jnp.int32)   # [S, B] tokens

    out = jax.block_until_ready(transformer_forward(src, kparams))
    ref = jax.block_until_ready(reference_forward(src, params))

    assert out.shape == (SEQ, BATCH, NTOKEN), out.shape
    assert np.all(np.isfinite(np.asarray(out)))
    # log_softmax rows must (approximately) sum to 1 in probability space.
    assert np.allclose(np.exp(np.asarray(out)).sum(-1), 1.0, atol=1e-3)
    # bf16 MXU operands + approx reciprocal are well within this tolerance.
    assert np.allclose(np.asarray(out), np.asarray(ref), atol=5e-2, rtol=5e-2)

    print("KERNEL_OK")
</pallas_src>

<mosaic_0001>
module attributes {stable_mosaic.version = 11 : i64} {
  func.func @model_kernel(%arg0: i32, %arg1: memref<8x2xi32, #tpu.memory_space<vmem>>, %arg2: memref<32x32xf32, #tpu.memory_space<vmem>>, %arg3: memref<8x32xf32, #tpu.memory_space<vmem>>, %arg4: memref<2x12x32x8xbf16, #tpu.memory_space<vmem>>, %arg5: memref<2x12x1x8xf32, #tpu.memory_space<vmem>>, %arg6: memref<2x4x8x32xbf16, #tpu.memory_space<vmem>>, %arg7: memref<2x1x32xf32, #tpu.memory_space<vmem>>, %arg8: memref<2x32x64xbf16, #tpu.memory_space<vmem>>, %arg9: memref<2x1x64xf32, #tpu.memory_space<vmem>>, %arg10: memref<2x64x32xbf16, #tpu.memory_space<vmem>>, %arg11: memref<2x1x32xf32, #tpu.memory_space<vmem>>, %arg12: memref<2x4x32xf32, #tpu.memory_space<vmem>>, %arg13: memref<32x32xbf16, #tpu.memory_space<vmem>>, %arg14: memref<1x32xf32, #tpu.memory_space<vmem>>, %arg15: memref<1x8x32xf32, #tpu.memory_space<vmem>>) attributes {dimension_semantics = [#tpu.dimension_semantics<parallel>], iteration_bounds = array<i64: 2>, scalar_prefetch = 0 : i64, scratch_operands = 0 : i64, tpu.core_type = #tpu.core_type<tc>, window_params = [{pipeline_mode = #tpu.pipeline_mode<synchronous>, transform_indices = @transform_0, window_bounds = array<i64: 8, 2>}, {pipeline_mode = #tpu.pipeline_mode<synchronous>, transform_indices = @transform_1, window_bounds = array<i64: 32, 32>}, {pipeline_mode = #tpu.pipeline_mode<synchronous>, transform_indices = @transform_2, window_bounds = array<i64: 8, 32>}, {pipeline_mode = #tpu.pipeline_mode<synchronous>, transform_indices = @transform_3, window_bounds = array<i64: 2, 12, 32, 8>}, {pipeline_mode = #tpu.pipeline_mode<synchronous>, transform_indices = @transform_4, window_bounds = array<i64: 2, 12, 1, 8>}, {pipeline_mode = #tpu.pipeline_mode<synchronous>, transform_indices = @transform_5, window_bounds = array<i64: 2, 4, 8, 32>}, {pipeline_mode = #tpu.pipeline_mode<synchronous>, transform_indices = @transform_6, window_bounds = array<i64: 2, 1, 32>}, {pipeline_mode = #tpu.pipeline_mode<synchronous>, transform_indices = @transform_7, window_bounds = array<i64: 2, 32, 64>}, {pipeline_mode = #tpu.pipeline_mode<synchronous>, transform_indices = @transform_8, window_bounds = array<i64: 2, 1, 64>}, {pipeline_mode = #tpu.pipeline_mode<synchronous>, transform_indices = @transform_9, window_bounds = array<i64: 2, 64, 32>}, {pipeline_mode = #tpu.pipeline_mode<synchronous>, transform_indices = @transform_10, window_bounds = array<i64: 2, 1, 32>}, {pipeline_mode = #tpu.pipeline_mode<synchronous>, transform_indices = @transform_11, window_bounds = array<i64: 2, 4, 32>}, {pipeline_mode = #tpu.pipeline_mode<synchronous>, transform_indices = @transform_12, window_bounds = array<i64: 32, 32>}, {pipeline_mode = #tpu.pipeline_mode<synchronous>, transform_indices = @transform_13, window_bounds = array<i64: 1, 32>}, {transform_indices = @transform_14, window_bounds = array<i64: 1, 8, 32>}]} {
    %c0 = arith.constant 0 : index
    %c0_0 = arith.constant 0 : index
    %0 = vector.load %arg1[%c0, %c0_0] : memref<8x2xi32, #tpu.memory_space<vmem>>, vector<8x2xi32>
    %1 = tpu.iota {dimensions = array<i32: 1>} : vector<8x2xi32>
    %2 = vector.broadcast %arg0 : i32 to vector<8x2xi32>
    %3 = arith.cmpi eq, %1, %2 : vector<8x2xi32>
    %c0_i32 = arith.constant 0 : i32
    %4 = vector.broadcast %c0_i32 : i32 to vector<8x2xi32>
    %5 = arith.select %3, %0, %4 : vector<8x2xi1>, vector<8x2xi32>
    %cst = arith.constant dense<0> : vector<8xi32>
    %6 = vector.multi_reduction <add>, %5, %cst [1] : vector<8x2xi32> to vector<8xi32>
    %7 = vector.shape_cast %6 : vector<8xi32> to vector<8x1xi32>
    %8 = tpu.iota {dimensions = array<i32: 1>} : vector<8x32xi32>
    %9 = vector.broadcast %7 : vector<8x1xi32> to vector<8x32xi32>
    %10 = arith.cmpi eq, %9, %8 : vector<8x32xi32>
    %11 = arith.extui %10 : vector<8x32xi1> to vector<8x32xi32>
    %12 = arith.sitofp %11 : vector<8x32xi32> to vector<8x32xf32>
    %c0_1 = arith.constant 0 : index
    %c0_2 = arith.constant 0 : index
    %13 = vector.load %arg2[%c0_1, %c0_2] : memref<32x32xf32, #tpu.memory_space<vmem>>, vector<32x32xf32>
    %cst_3 = arith.constant dense<0.000000e+00> : vector<8x32xf32>
    %14 = tpu.matmul %12, %13, %cst_3 {dimension_numbers = #tpu.dot_dimension_numbers<[1], [0], [0], [1], [0, 0, 1, 1], [], []>} : vector<8x32xf32>, vector<32x32xf32>, vector<8x32xf32> -> vector<8x32xf32>
    %c0_4 = arith.constant 0 : index
    %c0_5 = arith.constant 0 : index
    %15 = vector.load %arg3[%c0_4, %c0_5] : memref<8x32xf32, #tpu.memory_space<vmem>>, vector<8x32xf32>
    %16 = arith.addf %14, %15 : vector<8x32xf32>
    %17 = tpu.iota {dimensions = array<i32: 0>} : vector<8x8xi32>
    %18 = tpu.iota {dimensions = array<i32: 1>} : vector<8x8xi32>
    %19 = arith.cmpi sle, %18, %17 : vector<8x8xi32>
    %cst_6 = arith.constant 0.000000e+00 : f32
    %cst_7 = arith.constant -1.000000e+09 : f32
    %20 = vector.broadcast %cst_6 : f32 to vector<8x8xf32>
    %21 = vector.broadcast %cst_7 : f32 to vector<8x8xf32>
    %22 = arith.select %19, %20, %21 : vector<8x8xi1>, vector<8x8xf32>
    %c0_8 = arith.constant 0 : index
    %c0_9 = arith.constant 0 : index
    %c0_10 = arith.constant 0 : index
    %23 = vector.load %arg12[%c0_8, %c0_9, %c0_10] : memref<2x4x32xf32, #tpu.memory_space<vmem>>, vector<1x4x32xf32>
    %24 = vector.shape_cast %23 : vector<1x4x32xf32> to vector<4x32xf32>
    %25 = arith.truncf %16 : vector<8x32xf32> to vector<8x32xbf16>
    %26 = vector.shape_cast %25 : vector<8x32xbf16> to vector<1x8x32xbf16>
    %27 = vector.shape_cast %26 : vector<1x8x32xbf16> to vector<1x8x32xbf16>
    %28 = vector.broadcast %27 : vector<1x8x32xbf16> to vector<12x8x32xbf16>
    %c0_11 = arith.constant 0 : index
    %c0_12 = arith.constant 0 : index
    %c0_13 = arith.constant 0 : index
    %c0_14 = arith.constant 0 : index
    %29 = vector.load %arg4[%c0_11, %c0_12, %c0_13, %c0_14] : memref<2x12x32x8xbf16, #tpu.memory_space<vmem>>, vector<1x12x32x8xbf16>
    %30 = vector.shape_cast %29 : vector<1x12x32x8xbf16> to vector<12x32x8xbf16>
    "tpu.trace_start"() <{level = 10 : i32, message = "gsd,gde->gse"}> : () -> ()
    %cst_15 = arith.constant dense<0.000000e+00> : vector<12x8x8xf32>
    %31 = tpu.matmul %28, %30, %cst_15 {dimension_numbers = #tpu.dot_dimension_numbers<[2], [1], [1], [2], [0, 0, 0, 1, 1, 2], [0], [0]>} : vector<12x8x32xbf16>, vector<12x32x8xbf16>, vector<12x8x8xf32> -> vector<12x8x8xf32>
    "tpu.trace_stop"() : () -> ()
    %c0_16 = arith.constant 0 : index
    %c0_17 = arith.constant 0 : index
    %c0_18 = arith.constant 0 : index
    %c0_19 = arith.constant 0 : index
    %32 = vector.load %arg5[%c0_16, %c0_17, %c0_18, %c0_19] : memref<2x12x1x8xf32, #tpu.memory_space<vmem>>, vector<1x12x1x8xf32>
    %33 = vector.shape_cast %32 : vector<1x12x1x8xf32> to vector<12x1x8xf32>
    %34 = vector.broadcast %33 : vector<12x1x8xf32> to vector<12x8x8xf32>
    %35 = arith.addf %31, %34 : vector<12x8x8xf32>
    %36 = arith.truncf %35 : vector<12x8x8xf32> to vector<12x8x8xbf16>
    %37 = vector.extract_strided_slice %36 {offsets = [0, 0, 0], sizes = [4, 8, 8], strides = [1, 1, 1]} : vector<12x8x8xbf16> to vector<4x8x8xbf16>
    %38 = vector.extract_strided_slice %36 {offsets = [4, 0, 0], sizes = [4, 8, 8], strides = [1, 1, 1]} : vector<12x8x8xbf16> to vector<4x8x8xbf16>
    %39 = vector.extract_strided_slice %36 {offsets = [8, 0, 0], sizes = [4, 8, 8], strides = [1, 1, 1]} : vector<12x8x8xbf16> to vector<4x8x8xbf16>
    "tpu.trace_start"() <{level = 10 : i32, message = "hqd,hkd->hqk"}> : () -> ()
    %cst_20 = arith.constant dense<0.000000e+00> : vector<4x8x8xf32>
    %40 = tpu.matmul %37, %38, %cst_20 {dimension_numbers = #tpu.dot_dimension_numbers<[2], [2], [1], [1], [0, 0, 0, 1, 1, 1], [0], [0]>} : vector<4x8x8xbf16>, vector<4x8x8xbf16>, vector<4x8x8xf32> -> vector<4x8x8xf32>
    "tpu.trace_stop"() : () -> ()
    %41 = vector.shape_cast %22 : vector<8x8xf32> to vector<1x8x8xf32>
    %42 = vector.broadcast %41 : vector<1x8x8xf32> to vector<4x8x8xf32>
    %43 = arith.addf %40, %42 : vector<4x8x8xf32>
    %cst_21 = arith.constant dense<0xFF800000> : vector<4x8xf32>
    %44 = vector.multi_reduction <maximumf>, %43, %cst_21 [2] : vector<4x8x8xf32> to vector<4x8xf32>
    %45 = vector.shape_cast %44 : vector<4x8xf32> to vector<4x8x1xf32>
    %46 = vector.broadcast %45 : vector<4x8x1xf32> to vector<4x8x8xf32>
    %47 = arith.subf %43, %46 : vector<4x8x8xf32>
    %48 = math.exp %47 : vector<4x8x8xf32>
    %cst_22 = arith.constant dense<0.000000e+00> : vector<4x8xf32>
    %49 = vector.multi_reduction <add>, %48, %cst_22 [2] : vector<4x8x8xf32> to vector<4x8xf32>
    %50 = vector.shape_cast %49 : vector<4x8xf32> to vector<4x8x1xf32>
    %51 = tpu.reciprocal %50 {approx = true} : vector<4x8x1xf32> -> vector<4x8x1xf32>
    %52 = vector.broadcast %51 : vector<4x8x1xf32> to vector<4x8x8xf32>
    %53 = arith.mulf %48, %52 : vector<4x8x8xf32>
    %54 = arith.truncf %53 : vector<4x8x8xf32> to vector<4x8x8xbf16>
    "tpu.trace_start"() <{level = 10 : i32, message = "hqk,hkd->hqd"}> : () -> ()
    %cst_23 = arith.constant dense<0.000000e+00> : vector<4x8x8xf32>
    %55 = tpu.matmul %54, %39, %cst_23 {dimension_numbers = #tpu.dot_dimension_numbers<[2], [1], [1], [2], [0, 0, 0, 1, 1, 2], [0], [0]>} : vector<4x8x8xbf16>, vector<4x8x8xbf16>, vector<4x8x8xf32> -> vector<4x8x8xf32>
    "tpu.trace_stop"() : () -> ()
    %56 = arith.truncf %55 : vector<4x8x8xf32> to vector<4x8x8xbf16>
    %c0_24 = arith.constant 0 : index
    %c0_25 = arith.constant 0 : index
    %c0_26 = arith.constant 0 : index
    %c0_27 = arith.constant 0 : index
    %57 = vector.load %arg6[%c0_24, %c0_25, %c0_26, %c0_27] : memref<2x4x8x32xbf16, #tpu.memory_space<vmem>>, vector<1x4x8x32xbf16>
    %58 = vector.shape_cast %57 : vector<1x4x8x32xbf16> to vector<4x8x32xbf16>
    "tpu.trace_start"() <{level = 10 : i32, message = "hsd,hde->hse"}> : () -> ()
    %cst_28 = arith.constant dense<0.000000e+00> : vector<4x8x32xf32>
    %59 = tpu.matmul %56, %58, %cst_28 {dimension_numbers = #tpu.dot_dimension_numbers<[2], [1], [1], [2], [0, 0, 0, 1, 1, 2], [0], [0]>} : vector<4x8x8xbf16>, vector<4x8x32xbf16>, vector<4x8x32xf32> -> vector<4x8x32xf32>
    "tpu.trace_stop"() : () -> ()
    %cst_29 = arith.constant dense<0.000000e+00> : vector<8x32xf32>
    %60 = vector.multi_reduction <add>, %59, %cst_29 [0] : vector<4x8x32xf32> to vector<8x32xf32>
    %c0_30 = arith.constant 0 : index
    %c0_31 = arith.constant 0 : index
    %c0_32 = arith.constant 0 : index
    %61 = vector.load %arg7[%c0_30, %c0_31, %c0_32] : memref<2x1x32xf32, #tpu.memory_space<vmem>>, vector<1x1x32xf32>
    %62 = vector.shape_cast %61 : vector<1x1x32xf32> to vector<1x32xf32>
    %63 = vector.broadcast %62 : vector<1x32xf32> to vector<8x32xf32>
    %64 = arith.addf %60, %63 : vector<8x32xf32>
    %65 = arith.addf %16, %64 : vector<8x32xf32>
    %66 = vector.extract_strided_slice %24 {offsets = [0, 0], sizes = [1, 32], strides = [1, 1]} : vector<4x32xf32> to vector<1x32xf32>
    %67 = vector.extract_strided_slice %24 {offsets = [1, 0], sizes = [1, 32], strides = [1, 1]} : vector<4x32xf32> to vector<1x32xf32>
    %cst_33 = arith.constant dense<0.000000e+00> : vector<8xf32>
    %68 = vector.multi_reduction <add>, %65, %cst_33 [1] : vector<8x32xf32> to vector<8xf32>
    %69 = vector.shape_cast %68 : vector<8xf32> to vector<8x1xf32>
    %cst_34 = arith.constant 3.200000e+01 : f32
    %70 = vector.broadcast %cst_34 : f32 to vector<8x1xf32>
    %71 = arith.divf %69, %70 : vector<8x1xf32>
    %72 = vector.broadcast %71 : vector<8x1xf32> to vector<8x32xf32>
    %73 = arith.subf %65, %72 : vector<8x32xf32>
    %74 = arith.mulf %73, %73 : vector<8x32xf32>
    %cst_35 = arith.constant dense<0.000000e+00> : vector<8xf32>
    %75 = vector.multi_reduction <add>, %74, %cst_35 [1] : vector<8x32xf32> to vector<8xf32>
    %76 = vector.shape_cast %75 : vector<8xf32> to vector<8x1xf32>
    %cst_36 = arith.constant 3.200000e+01 : f32
    %77 = vector.broadcast %cst_36 : f32 to vector<8x1xf32>
    %78 = arith.divf %76, %77 : vector<8x1xf32>
    %79 = vector.broadcast %71 : vector<8x1xf32> to vector<8x32xf32>
    %80 = arith.subf %65, %79 : vector<8x32xf32>
    %cst_37 = arith.constant 9.99999974E-6 : f32
    %81 = vector.broadcast %cst_37 : f32 to vector<8x1xf32>
    %82 = arith.addf %78, %81 : vector<8x1xf32>
    %83 = math.rsqrt %82 : vector<8x1xf32>
    %84 = vector.broadcast %83 : vector<8x1xf32> to vector<8x32xf32>
    %85 = arith.mulf %80, %84 : vector<8x32xf32>
    %86 = vector.broadcast %66 : vector<1x32xf32> to vector<8x32xf32>
    %87 = arith.mulf %85, %86 : vector<8x32xf32>
    %88 = vector.broadcast %67 : vector<1x32xf32> to vector<8x32xf32>
    %89 = arith.addf %87, %88 : vector<8x32xf32>
    %90 = arith.truncf %89 : vector<8x32xf32> to vector<8x32xbf16>
    %c0_38 = arith.constant 0 : index
    %c0_39 = arith.constant 0 : index
    %c0_40 = arith.constant 0 : index
    %91 = vector.load %arg8[%c0_38, %c0_39, %c0_40] : memref<2x32x64xbf16, #tpu.memory_space<vmem>>, vector<1x32x64xbf16>
    %92 = vector.shape_cast %91 : vector<1x32x64xbf16> to vector<32x64xbf16>
    %cst_41 = arith.constant dense<0.000000e+00> : vector<8x64xf32>
    %93 = tpu.matmul %90, %92, %cst_41 {dimension_numbers = #tpu.dot_dimension_numbers<[1], [0], [0], [1], [0, 0, 1, 1], [], []>} : vector<8x32xbf16>, vector<32x64xbf16>, vector<8x64xf32> -> vector<8x64xf32>
    %c0_42 = arith.constant 0 : index
    %c0_43 = arith.constant 0 : index
    %c0_44 = arith.constant 0 : index
    %94 = vector.load %arg9[%c0_42, %c0_43, %c0_44] : memref<2x1x64xf32, #tpu.memory_space<vmem>>, vector<1x1x64xf32>
    %95 = vector.shape_cast %94 : vector<1x1x64xf32> to vector<1x64xf32>
    %96 = vector.broadcast %95 : vector<1x64xf32> to vector<8x64xf32>
    %97 = arith.addf %93, %96 : vector<8x64xf32>
    %cst_45 = arith.constant 0.000000e+00 : f32
    %98 = vector.broadcast %cst_45 : f32 to vector<8x64xf32>
    %99 = arith.maximumf %97, %98 : vector<8x64xf32>
    %100 = arith.truncf %99 : vector<8x64xf32> to vector<8x64xbf16>
    %c0_46 = arith.constant 0 : index
    %c0_47 = arith.constant 0 : index
    %c0_48 = arith.constant 0 : index
    %101 = vector.load %arg10[%c0_46, %c0_47, %c0_48] : memref<2x64x32xbf16, #tpu.memory_space<vmem>>, vector<1x64x32xbf16>
    %102 = vector.shape_cast %101 : vector<1x64x32xbf16> to vector<64x32xbf16>
    %cst_49 = arith.constant dense<0.000000e+00> : vector<8x32xf32>
    %103 = tpu.matmul %100, %102, %cst_49 {dimension_numbers = #tpu.dot_dimension_numbers<[1], [0], [0], [1], [0, 0, 1, 1], [], []>} : vector<8x64xbf16>, vector<64x32xbf16>, vector<8x32xf32> -> vector<8x32xf32>
    %c0_50 = arith.constant 0 : index
    %c0_51 = arith.constant 0 : index
    %c0_52 = arith.constant 0 : index
    %104 = vector.load %arg11[%c0_50, %c0_51, %c0_52] : memref<2x1x32xf32, #tpu.memory_space<vmem>>, vector<1x1x32xf32>
    %105 = vector.shape_cast %104 : vector<1x1x32xf32> to vector<1x32xf32>
    %106 = vector.broadcast %105 : vector<1x32xf32> to vector<8x32xf32>
    %107 = arith.addf %103, %106 : vector<8x32xf32>
    %108 = arith.addf %89, %107 : vector<8x32xf32>
    %109 = vector.extract_strided_slice %24 {offsets = [2, 0], sizes = [1, 32], strides = [1, 1]} : vector<4x32xf32> to vector<1x32xf32>
    %110 = vector.extract_strided_slice %24 {offsets = [3, 0], sizes = [1, 32], strides = [1, 1]} : vector<4x32xf32> to vector<1x32xf32>
    %cst_53 = arith.constant dense<0.000000e+00> : vector<8xf32>
    %111 = vector.multi_reduction <add>, %108, %cst_53 [1] : vector<8x32xf32> to vector<8xf32>
    %112 = vector.shape_cast %111 : vector<8xf32> to vector<8x1xf32>
    %cst_54 = arith.constant 3.200000e+01 : f32
    %113 = vector.broadcast %cst_54 : f32 to vector<8x1xf32>
    %114 = arith.divf %112, %113 : vector<8x1xf32>
    %115 = vector.broadcast %114 : vector<8x1xf32> to vector<8x32xf32>
    %116 = arith.subf %108, %115 : vector<8x32xf32>
    %117 = arith.mulf %116, %116 : vector<8x32xf32>
    %cst_55 = arith.constant dense<0.000000e+00> : vector<8xf32>
    %118 = vector.multi_reduction <add>, %117, %cst_55 [1] : vector<8x32xf32> to vector<8xf32>
    %119 = vector.shape_cast %118 : vector<8xf32> to vector<8x1xf32>
    %cst_56 = arith.constant 3.200000e+01 : f32
    %120 = vector.broadcast %cst_56 : f32 to vector<8x1xf32>
    %121 = arith.divf %119, %120 : vector<8x1xf32>
    %122 = vector.broadcast %114 : vector<8x1xf32> to vector<8x32xf32>
    %123 = arith.subf %108, %122 : vector<8x32xf32>
    %cst_57 = arith.constant 9.99999974E-6 : f32
    %124 = vector.broadcast %cst_57 : f32 to vector<8x1xf32>
    %125 = arith.addf %121, %124 : vector<8x1xf32>
    %126 = math.rsqrt %125 : vector<8x1xf32>
    %127 = vector.broadcast %126 : vector<8x1xf32> to vector<8x32xf32>
    %128 = arith.mulf %123, %127 : vector<8x32xf32>
    %129 = vector.broadcast %109 : vector<1x32xf32> to vector<8x32xf32>
    %130 = arith.mulf %128, %129 : vector<8x32xf32>
    %131 = vector.broadcast %110 : vector<1x32xf32> to vector<8x32xf32>
    %132 = arith.addf %130, %131 : vector<8x32xf32>
    %c1 = arith.constant 1 : index
    %c0_58 = arith.constant 0 : index
    %c0_59 = arith.constant 0 : index
    %133 = vector.load %arg12[%c1, %c0_58, %c0_59] : memref<2x4x32xf32, #tpu.memory_space<vmem>>, vector<1x4x32xf32>
    %134 = vector.shape_cast %133 : vector<1x4x32xf32> to vector<4x32xf32>
    %135 = arith.truncf %132 : vector<8x32xf32> to vector<8x32xbf16>
    %136 = vector.shape_cast %135 : vector<8x32xbf16> to vector<1x8x32xbf16>
    %137 = vector.shape_cast %136 : vector<1x8x32xbf16> to vector<1x8x32xbf16>
    %138 = vector.broadcast %137 : vector<1x8x32xbf16> to vector<12x8x32xbf16>
    %c1_60 = arith.constant 1 : index
    %c0_61 = arith.constant 0 : index
    %c0_62 = arith.constant 0 : index
    %c0_63 = arith.constant 0 : index
    %139 = vector.load %arg4[%c1_60, %c0_61, %c0_62, %c0_63] : memref<2x12x32x8xbf16, #tpu.memory_space<vmem>>, vector<1x12x32x8xbf16>
    %140 = vector.shape_cast %139 : vector<1x12x32x8xbf16> to vector<12x32x8xbf16>
    "tpu.trace_start"() <{level = 10 : i32, message = "gsd,gde->gse"}> : () -> ()
    %cst_64 = arith.constant dense<0.000000e+00> : vector<12x8x8xf32>
    %141 = tpu.matmul %138, %140, %cst_64 {dimension_numbers = #tpu.dot_dimension_numbers<[2], [1], [1], [2], [0, 0, 0, 1, 1, 2], [0], [0]>} : vector<12x8x32xbf16>, vector<12x32x8xbf16>, vector<12x8x8xf32> -> vector<12x8x8xf32>
    "tpu.trace_stop"() : () -> ()
    %c1_65 = arith.constant 1 : index
    %c0_66 = arith.constant 0 : index
    %c0_67 = arith.constant 0 : index
    %c0_68 = arith.constant 0 : index
    %142 = vector.load %arg5[%c1_65, %c0_66, %c0_67, %c0_68] : memref<2x12x1x8xf32, #tpu.memory_space<vmem>>, vector<1x12x1x8xf32>
    %143 = vector.shape_cast %142 : vector<1x12x1x8xf32> to vector<12x1x8xf32>
    %144 = vector.broadcast %143 : vector<12x1x8xf32> to vector<12x8x8xf32>
    %145 = arith.addf %141, %144 : vector<12x8x8xf32>
    %146 = arith.truncf %145 : vector<12x8x8xf32> to vector<12x8x8xbf16>
    %147 = vector.extract_strided_slice %146 {offsets = [0, 0, 0], sizes = [4, 8, 8], strides = [1, 1, 1]} : vector<12x8x8xbf16> to vector<4x8x8xbf16>
    %148 = vector.extract_strided_slice %146 {offsets = [4, 0, 0], sizes = [4, 8, 8], strides = [1, 1, 1]} : vector<12x8x8xbf16> to vector<4x8x8xbf16>
    %149 = vector.extract_strided_slice %146 {offsets = [8, 0, 0], sizes = [4, 8, 8], strides = [1, 1, 1]} : vector<12x8x8xbf16> to vector<4x8x8xbf16>
    "tpu.trace_start"() <{level = 10 : i32, message = "hqd,hkd->hqk"}> : () -> ()
    %cst_69 = arith.constant dense<0.000000e+00> : vector<4x8x8xf32>
    %150 = tpu.matmul %147, %148, %cst_69 {dimension_numbers = #tpu.dot_dimension_numbers<[2], [2], [1], [1], [0, 0, 0, 1, 1, 1], [0], [0]>} : vector<4x8x8xbf16>, vector<4x8x8xbf16>, vector<4x8x8xf32> -> vector<4x8x8xf32>
    "tpu.trace_stop"() : () -> ()
    %151 = vector.shape_cast %22 : vector<8x8xf32> to vector<1x8x8xf32>
    %152 = vector.broadcast %151 : vector<1x8x8xf32> to vector<4x8x8xf32>
    %153 = arith.addf %150, %152 : vector<4x8x8xf32>
    %cst_70 = arith.constant dense<0xFF800000> : vector<4x8xf32>
    %154 = vector.multi_reduction <maximumf>, %153, %cst_70 [2] : vector<4x8x8xf32> to vector<4x8xf32>
    %155 = vector.shape_cast %154 : vector<4x8xf32> to vector<4x8x1xf32>
    %156 = vector.broadcast %155 : vector<4x8x1xf32> to vector<4x8x8xf32>
    %157 = arith.subf %153, %156 : vector<4x8x8xf32>
    %158 = math.exp %157 : vector<4x8x8xf32>
    %cst_71 = arith.constant dense<0.000000e+00> : vector<4x8xf32>
    %159 = vector.multi_reduction <add>, %158, %cst_71 [2] : vector<4x8x8xf32> to vector<4x8xf32>
    %160 = vector.shape_cast %159 : vector<4x8xf32> to vector<4x8x1xf32>
    %161 = tpu.reciprocal %160 {approx = true} : vector<4x8x1xf32> -> vector<4x8x1xf32>
    %162 = vector.broadcast %161 : vector<4x8x1xf32> to vector<4x8x8xf32>
    %163 = arith.mulf %158, %162 : vector<4x8x8xf32>
    %164 = arith.truncf %163 : vector<4x8x8xf32> to vector<4x8x8xbf16>
    "tpu.trace_start"() <{level = 10 : i32, message = "hqk,hkd->hqd"}> : () -> ()
    %cst_72 = arith.constant dense<0.000000e+00> : vector<4x8x8xf32>
    %165 = tpu.matmul %164, %149, %cst_72 {dimension_numbers = #tpu.dot_dimension_numbers<[2], [1], [1], [2], [0, 0, 0, 1, 1, 2], [0], [0]>} : vector<4x8x8xbf16>, vector<4x8x8xbf16>, vector<4x8x8xf32> -> vector<4x8x8xf32>
    "tpu.trace_stop"() : () -> ()
    %166 = arith.truncf %165 : vector<4x8x8xf32> to vector<4x8x8xbf16>
    %c1_73 = arith.constant 1 : index
    %c0_74 = arith.constant 0 : index
    %c0_75 = arith.constant 0 : index
    %c0_76 = arith.constant 0 : index
    %167 = vector.load %arg6[%c1_73, %c0_74, %c0_75, %c0_76] : memref<2x4x8x32xbf16, #tpu.memory_space<vmem>>, vector<1x4x8x32xbf16>
    %168 = vector.shape_cast %167 : vector<1x4x8x32xbf16> to vector<4x8x32xbf16>
    "tpu.trace_start"() <{level = 10 : i32, message = "hsd,hde->hse"}> : () -> ()
    %cst_77 = arith.constant dense<0.000000e+00> : vector<4x8x32xf32>
    %169 = tpu.matmul %166, %168, %cst_77 {dimension_numbers = #tpu.dot_dimension_numbers<[2], [1], [1], [2], [0, 0, 0, 1, 1, 2], [0], [0]>} : vector<4x8x8xbf16>, vector<4x8x32xbf16>, vector<4x8x32xf32> -> vector<4x8x32xf32>
    "tpu.trace_stop"() : () -> ()
    %cst_78 = arith.constant dense<0.000000e+00> : vector<8x32xf32>
    %170 = vector.multi_reduction <add>, %169, %cst_78 [0] : vector<4x8x32xf32> to vector<8x32xf32>
    %c1_79 = arith.constant 1 : index
    %c0_80 = arith.constant 0 : index
    %c0_81 = arith.constant 0 : index
    %171 = vector.load %arg7[%c1_79, %c0_80, %c0_81] : memref<2x1x32xf32, #tpu.memory_space<vmem>>, vector<1x1x32xf32>
    %172 = vector.shape_cast %171 : vector<1x1x32xf32> to vector<1x32xf32>
    %173 = vector.broadcast %172 : vector<1x32xf32> to vector<8x32xf32>
    %174 = arith.addf %170, %173 : vector<8x32xf32>
    %175 = arith.addf %132, %174 : vector<8x32xf32>
    %176 = vector.extract_strided_slice %134 {offsets = [0, 0], sizes = [1, 32], strides = [1, 1]} : vector<4x32xf32> to vector<1x32xf32>
    %177 = vector.extract_strided_slice %134 {offsets = [1, 0], sizes = [1, 32], strides = [1, 1]} : vector<4x32xf32> to vector<1x32xf32>
    %cst_82 = arith.constant dense<0.000000e+00> : vector<8xf32>
    %178 = vector.multi_reduction <add>, %175, %cst_82 [1] : vector<8x32xf32> to vector<8xf32>
    %179 = vector.shape_cast %178 : vector<8xf32> to vector<8x1xf32>
    %cst_83 = arith.constant 3.200000e+01 : f32
    %180 = vector.broadcast %cst_83 : f32 to vector<8x1xf32>
    %181 = arith.divf %179, %180 : vector<8x1xf32>
    %182 = vector.broadcast %181 : vector<8x1xf32> to vector<8x32xf32>
    %183 = arith.subf %175, %182 : vector<8x32xf32>
    %184 = arith.mulf %183, %183 : vector<8x32xf32>
    %cst_84 = arith.constant dense<0.000000e+00> : vector<8xf32>
    %185 = vector.multi_reduction <add>, %184, %cst_84 [1] : vector<8x32xf32> to vector<8xf32>
    %186 = vector.shape_cast %185 : vector<8xf32> to vector<8x1xf32>
    %cst_85 = arith.constant 3.200000e+01 : f32
    %187 = vector.broadcast %cst_85 : f32 to vector<8x1xf32>
    %188 = arith.divf %186, %187 : vector<8x1xf32>
    %189 = vector.broadcast %181 : vector<8x1xf32> to vector<8x32xf32>
    %190 = arith.subf %175, %189 : vector<8x32xf32>
    %cst_86 = arith.constant 9.99999974E-6 : f32
    %191 = vector.broadcast %cst_86 : f32 to vector<8x1xf32>
    %192 = arith.addf %188, %191 : vector<8x1xf32>
    %193 = math.rsqrt %192 : vector<8x1xf32>
    %194 = vector.broadcast %193 : vector<8x1xf32> to vector<8x32xf32>
    %195 = arith.mulf %190, %194 : vector<8x32xf32>
    %196 = vector.broadcast %176 : vector<1x32xf32> to vector<8x32xf32>
    %197 = arith.mulf %195, %196 : vector<8x32xf32>
    %198 = vector.broadcast %177 : vector<1x32xf32> to vector<8x32xf32>
    %199 = arith.addf %197, %198 : vector<8x32xf32>
    %200 = arith.truncf %199 : vector<8x32xf32> to vector<8x32xbf16>
    %c1_87 = arith.constant 1 : index
    %c0_88 = arith.constant 0 : index
    %c0_89 = arith.constant 0 : index
    %201 = vector.load %arg8[%c1_87, %c0_88, %c0_89] : memref<2x32x64xbf16, #tpu.memory_space<vmem>>, vector<1x32x64xbf16>
    %202 = vector.shape_cast %201 : vector<1x32x64xbf16> to vector<32x64xbf16>
    %cst_90 = arith.constant dense<0.000000e+00> : vector<8x64xf32>
    %203 = tpu.matmul %200, %202, %cst_90 {dimension_numbers = #tpu.dot_dimension_numbers<[1], [0], [0], [1], [0, 0, 1, 1], [], []>} : vector<8x32xbf16>, vector<32x64xbf16>, vector<8x64xf32> -> vector<8x64xf32>
    %c1_91 = arith.constant 1 : index
    %c0_92 = arith.constant 0 : index
    %c0_93 = arith.constant 0 : index
    %204 = vector.load %arg9[%c1_91, %c0_92, %c0_93] : memref<2x1x64xf32, #tpu.memory_space<vmem>>, vector<1x1x64xf32>
    %205 = vector.shape_cast %204 : vector<1x1x64xf32> to vector<1x64xf32>
    %206 = vector.broadcast %205 : vector<1x64xf32> to vector<8x64xf32>
    %207 = arith.addf %203, %206 : vector<8x64xf32>
    %cst_94 = arith.constant 0.000000e+00 : f32
    %208 = vector.broadcast %cst_94 : f32 to vector<8x64xf32>
    %209 = arith.maximumf %207, %208 : vector<8x64xf32>
    %210 = arith.truncf %209 : vector<8x64xf32> to vector<8x64xbf16>
    %c1_95 = arith.constant 1 : index
    %c0_96 = arith.constant 0 : index
    %c0_97 = arith.constant 0 : index
    %211 = vector.load %arg10[%c1_95, %c0_96, %c0_97] : memref<2x64x32xbf16, #tpu.memory_space<vmem>>, vector<1x64x32xbf16>
    %212 = vector.shape_cast %211 : vector<1x64x32xbf16> to vector<64x32xbf16>
    %cst_98 = arith.constant dense<0.000000e+00> : vector<8x32xf32>
    %213 = tpu.matmul %210, %212, %cst_98 {dimension_numbers = #tpu.dot_dimension_numbers<[1], [0], [0], [1], [0, 0, 1, 1], [], []>} : vector<8x64xbf16>, vector<64x32xbf16>, vector<8x32xf32> -> vector<8x32xf32>
    %c1_99 = arith.constant 1 : index
    %c0_100 = arith.constant 0 : index
    %c0_101 = arith.constant 0 : index
    %214 = vector.load %arg11[%c1_99, %c0_100, %c0_101] : memref<2x1x32xf32, #tpu.memory_space<vmem>>, vector<1x1x32xf32>
    %215 = vector.shape_cast %214 : vector<1x1x32xf32> to vector<1x32xf32>
    %216 = vector.broadcast %215 : vector<1x32xf32> to vector<8x32xf32>
    %217 = arith.addf %213, %216 : vector<8x32xf32>
    %218 = arith.addf %199, %217 : vector<8x32xf32>
    %219 = vector.extract_strided_slice %134 {offsets = [2, 0], sizes = [1, 32], strides = [1, 1]} : vector<4x32xf32> to vector<1x32xf32>
    %220 = vector.extract_strided_slice %134 {offsets = [3, 0], sizes = [1, 32], strides = [1, 1]} : vector<4x32xf32> to vector<1x32xf32>
    %cst_102 = arith.constant dense<0.000000e+00> : vector<8xf32>
    %221 = vector.multi_reduction <add>, %218, %cst_102 [1] : vector<8x32xf32> to vector<8xf32>
    %222 = vector.shape_cast %221 : vector<8xf32> to vector<8x1xf32>
    %cst_103 = arith.constant 3.200000e+01 : f32
    %223 = vector.broadcast %cst_103 : f32 to vector<8x1xf32>
    %224 = arith.divf %222, %223 : vector<8x1xf32>
    %225 = vector.broadcast %224 : vector<8x1xf32> to vector<8x32xf32>
    %226 = arith.subf %218, %225 : vector<8x32xf32>
    %227 = arith.mulf %226, %226 : vector<8x32xf32>
    %cst_104 = arith.constant dense<0.000000e+00> : vector<8xf32>
    %228 = vector.multi_reduction <add>, %227, %cst_104 [1] : vector<8x32xf32> to vector<8xf32>
    %229 = vector.shape_cast %228 : vector<8xf32> to vector<8x1xf32>
    %cst_105 = arith.constant 3.200000e+01 : f32
    %230 = vector.broadcast %cst_105 : f32 to vector<8x1xf32>
    %231 = arith.divf %229, %230 : vector<8x1xf32>
    %232 = vector.broadcast %224 : vector<8x1xf32> to vector<8x32xf32>
    %233 = arith.subf %218, %232 : vector<8x32xf32>
    %cst_106 = arith.constant 9.99999974E-6 : f32
    %234 = vector.broadcast %cst_106 : f32 to vector<8x1xf32>
    %235 = arith.addf %231, %234 : vector<8x1xf32>
    %236 = math.rsqrt %235 : vector<8x1xf32>
    %237 = vector.broadcast %236 : vector<8x1xf32> to vector<8x32xf32>
    %238 = arith.mulf %233, %237 : vector<8x32xf32>
    %239 = vector.broadcast %219 : vector<1x32xf32> to vector<8x32xf32>
    %240 = arith.mulf %238, %239 : vector<8x32xf32>
    %241 = vector.broadcast %220 : vector<1x32xf32> to vector<8x32xf32>
    %242 = arith.addf %240, %241 : vector<8x32xf32>
    %243 = arith.truncf %242 : vector<8x32xf32> to vector<8x32xbf16>
    %c0_107 = arith.constant 0 : index
    %c0_108 = arith.constant 0 : index
    %244 = vector.load %arg13[%c0_107, %c0_108] : memref<32x32xbf16, #tpu.memory_space<vmem>>, vector<32x32xbf16>
    %cst_109 = arith.constant dense<0.000000e+00> : vector<8x32xf32>
    %245 = tpu.matmul %243, %244, %cst_109 {dimension_numbers = #tpu.dot_dimension_numbers<[1], [0], [0], [1], [0, 0, 1, 1], [], []>} : vector<8x32xbf16>, vector<32x32xbf16>, vector<8x32xf32> -> vector<8x32xf32>
    %c0_110 = arith.constant 0 : index
    %c0_111 = arith.constant 0 : index
    %246 = vector.load %arg14[%c0_110, %c0_111] : memref<1x32xf32, #tpu.memory_space<vmem>>, vector<1x32xf32>
    %247 = vector.broadcast %246 : vector<1x32xf32> to vector<8x32xf32>
    %248 = arith.addf %245, %247 : vector<8x32xf32>
    %cst_112 = arith.constant dense<0xFF800000> : vector<8xf32>
    %249 = vector.multi_reduction <maximumf>, %248, %cst_112 [1] : vector<8x32xf32> to vector<8xf32>
    %250 = vector.shape_cast %249 : vector<8xf32> to vector<8x1xf32>
    %251 = vector.broadcast %250 : vector<8x1xf32> to vector<8x32xf32>
    %252 = arith.subf %248, %251 : vector<8x32xf32>
    %253 = math.exp %252 : vector<8x32xf32>
    %cst_113 = arith.constant dense<0.000000e+00> : vector<8xf32>
    %254 = vector.multi_reduction <add>, %253, %cst_113 [1] : vector<8x32xf32> to vector<8xf32>
    %255 = vector.shape_cast %254 : vector<8xf32> to vector<8x1xf32>
    %256 = math.log %255 : vector<8x1xf32>
    %257 = vector.broadcast %256 : vector<8x1xf32> to vector<8x32xf32>
    %258 = arith.subf %252, %257 : vector<8x32xf32>
    %c0_114 = arith.constant 0 : index
    %c0_115 = arith.constant 0 : index
    %c0_116 = arith.constant 0 : index
    %259 = vector.load %arg15[%c0_114, %c0_115, %c0_116] : memref<1x8x32xf32, #tpu.memory_space<vmem>>, vector<1x8x32xf32>
    %260 = vector.shape_cast %259 : vector<1x8x32xf32> to vector<8x32xf32>
    %261 = vector.shape_cast %258 : vector<8x32xf32> to vector<1x8x32xf32>
    tpu.vector_store %arg15[%c0_114, %c0_115, %c0_116], %261 {strides = array<i32>} : memref<1x8x32xf32, #tpu.memory_space<vmem>>, vector<1x8x32xf32>,
    return
  }
  func.func @transform_0(%arg0: i32) -> (i32, i32) {
    %c0_i32 = arith.constant 0 : i32
    %c0_i32_0 = arith.constant 0 : i32
    %c0_i32_1 = arith.constant 0 : i32
    return %c0_i32, %c0_i32_0 : i32, i32
  }
  func.func @transform_1(%arg0: i32) -> (i32, i32) {
    %c0_i32 = arith.constant 0 : i32
    %c0_i32_0 = arith.constant 0 : i32
    %c0_i32_1 = arith.constant 0 : i32
    return %c0_i32, %c0_i32_0 : i32, i32
  }
  func.func @transform_2(%arg0: i32) -> (i32, i32) {
    %c0_i32 = arith.constant 0 : i32
    %c0_i32_0 = arith.constant 0 : i32
    %c0_i32_1 = arith.constant 0 : i32
    return %c0_i32, %c0_i32_0 : i32, i32
  }
  func.func @transform_3(%arg0: i32) -> (i32, i32, i32, i32) {
    %c0_i32 = arith.constant 0 : i32
    %c0_i32_0 = arith.constant 0 : i32
    %c0_i32_1 = arith.constant 0 : i32
    %c0_i32_2 = arith.constant 0 : i32
    %c0_i32_3 = arith.constant 0 : i32
    return %c0_i32, %c0_i32_0, %c0_i32_1, %c0_i32_2 : i32, i32, i32, i32
  }
  func.func @transform_4(%arg0: i32) -> (i32, i32, i32, i32) {
    %c0_i32 = arith.constant 0 : i32
    %c0_i32_0 = arith.constant 0 : i32
    %c0_i32_1 = arith.constant 0 : i32
    %c0_i32_2 = arith.constant 0 : i32
    %c0_i32_3 = arith.constant 0 : i32
    return %c0_i32, %c0_i32_0, %c0_i32_1, %c0_i32_2 : i32, i32, i32, i32
  }
  func.func @transform_5(%arg0: i32) -> (i32, i32, i32, i32) {
    %c0_i32 = arith.constant 0 : i32
    %c0_i32_0 = arith.constant 0 : i32
    %c0_i32_1 = arith.constant 0 : i32
    %c0_i32_2 = arith.constant 0 : i32
    %c0_i32_3 = arith.constant 0 : i32
    return %c0_i32, %c0_i32_0, %c0_i32_1, %c0_i32_2 : i32, i32, i32, i32
  }
  func.func @transform_6(%arg0: i32) -> (i32, i32, i32) {
    %c0_i32 = arith.constant 0 : i32
    %c0_i32_0 = arith.constant 0 : i32
    %c0_i32_1 = arith.constant 0 : i32
    %c0_i32_2 = arith.constant 0 : i32
    return %c0_i32, %c0_i32_0, %c0_i32_1 : i32, i32, i32
  }
  func.func @transform_7(%arg0: i32) -> (i32, i32, i32) {
    %c0_i32 = arith.constant 0 : i32
    %c0_i32_0 = arith.constant 0 : i32
    %c0_i32_1 = arith.constant 0 : i32
    %c0_i32_2 = arith.constant 0 : i32
    return %c0_i32, %c0_i32_0, %c0_i32_1 : i32, i32, i32
  }
  func.func @transform_8(%arg0: i32) -> (i32, i32, i32) {
    %c0_i32 = arith.constant 0 : i32
    %c0_i32_0 = arith.constant 0 : i32
    %c0_i32_1 = arith.constant 0 : i32
    %c0_i32_2 = arith.constant 0 : i32
    return %c0_i32, %c0_i32_0, %c0_i32_1 : i32, i32, i32
  }
  func.func @transform_9(%arg0: i32) -> (i32, i32, i32) {
    %c0_i32 = arith.constant 0 : i32
    %c0_i32_0 = arith.constant 0 : i32
    %c0_i32_1 = arith.constant 0 : i32
    %c0_i32_2 = arith.constant 0 : i32
    return %c0_i32, %c0_i32_0, %c0_i32_1 : i32, i32, i32
  }
  func.func @transform_10(%arg0: i32) -> (i32, i32, i32) {
    %c0_i32 = arith.constant 0 : i32
    %c0_i32_0 = arith.constant 0 : i32
    %c0_i32_1 = arith.constant 0 : i32
    %c0_i32_2 = arith.constant 0 : i32
    return %c0_i32, %c0_i32_0, %c0_i32_1 : i32, i32, i32
  }
  func.func @transform_11(%arg0: i32) -> (i32, i32, i32) {
    %c0_i32 = arith.constant 0 : i32
    %c0_i32_0 = arith.constant 0 : i32
    %c0_i32_1 = arith.constant 0 : i32
    %c0_i32_2 = arith.constant 0 : i32
    return %c0_i32, %c0_i32_0, %c0_i32_1 : i32, i32, i32
  }
  func.func @transform_12(%arg0: i32) -> (i32, i32) {
    %c0_i32 = arith.constant 0 : i32
    %c0_i32_0 = arith.constant 0 : i32
    %c0_i32_1 = arith.constant 0 : i32
    return %c0_i32, %c0_i32_0 : i32, i32
  }
  func.func @transform_13(%arg0: i32) -> (i32, i32) {
    %c0_i32 = arith.constant 0 : i32
    %c0_i32_0 = arith.constant 0 : i32
    %c0_i32_1 = arith.constant 0 : i32
    return %c0_i32, %c0_i32_0 : i32, i32
  }
  func.func @transform_14(%arg0: i32) -> (i32, i32, i32) {
    %c0_i32 = arith.constant 0 : i32
    %c0_i32_0 = arith.constant 0 : i32
    %c0_i32_1 = arith.constant 0 : i32
    return %arg0, %c0_i32, %c0_i32_0 : i32, i32, i32
  }
}

</mosaic_0001>

<bundles_post_ra>
// kernel: tpu_custom_call.1
= control target key start
LH: loop header
LB: loop body
LE: loop exit
PB: predicated region body
PF: predicated region fallthrough
CT: control target
= control target key end

     0   :  { %s5779_s0 = inlined_call_operand.vmem [shape: s32[8,2], index: 0, kind: input, shape index: {}]   ;;  %s5780_s1 = inlined_call_operand.vmem [shape: f32[32,32], index: 1, kind: input, shape index: {}]   ;;  %s5781_s2 = inlined_call_operand.vmem [shape: f32[8,32], index: 2, kind: input, shape index: {}]   ;;  %s5782_s3 = inlined_call_operand.vmem [shape: bf16[2,12,32,8], index: 3, kind: input, shape index: {}]   ;;  %s5783_s4 = inlined_call_operand.vmem [shape: f32[2,12,1,8], index: 4, kind: input, shape index: {}]   ;;  %s5784_s5 = inlined_call_operand.vmem [shape: bf16[2,4,8,32], index: 5, kind: input, shape index: {}]   ;;  %s5785_s6 = inlined_call_operand.vmem [shape: f32[2,1,32], index: 6, kind: input, shape index: {}]   ;;  %s5786_s7 = inlined_call_operand.vmem [shape: bf16[2,32,64], index: 7, kind: input, shape index: {}]   ;;  %s5787_s8 = inlined_call_operand.vmem [shape: f32[2,1,64], index: 8, kind: input, shape index: {}]   ;;  %s5788_s9 = inlined_call_operand.vmem [shape: bf16[2,64,32], index: 9, kind: input, shape index: {}]   ;;  %s5789_s10 = inlined_call_operand.vmem [shape: f32[2,1,32], index: 10, kind: input, shape index: {}]   ;;  %s5790_s11 = inlined_call_operand.vmem [shape: f32[2,4,32], index: 11, kind: input, shape index: {}]   ;;  %s5791_s12 = inlined_call_operand.vmem [shape: bf16[32,32], index: 12, kind: input, shape index: {}]   ;;  %s5792_s13 = inlined_call_operand.vmem [shape: f32[1,32], index: 13, kind: input, shape index: {}]   ;;  %s5793_s14 = inlined_call_operand.hbm [shape: f32[2,8,32], index: 14, kind: output, shape index: {}]  }
   0x1   :  { %5794 = sst [smem:[#allocation5_spill]] %s5779_s0 }
   0x2   :  { %5795 = sst [smem:[#allocation6_spill]] %s5780_s1 }
   0x3   :  { %5796 = sst [smem:[#allocation7_spill]] %s5781_s2 }
   0x4   :  { %5797 = sst [smem:[#allocation8_spill]] %s5782_s3 }
   0x5   :  { %5798 = sst [smem:[#allocation9_spill]] %s5783_s4 }
   0x6   :  { %19 = vsyncpa [#allocation3], 0 }
   0x7   :  { %21 = vsyncpa [#allocation3 + $0x1], 0  ;;  %s4961_s29 = smov 0   ;;  %s4963_s30 = smov 0  }
   0x8   :  { %s4965_s15 = smov 0   ;;  %s4967_s16 = smov 0  }
   0x9 LB: > { %s4982_s17 = sadd.s32 4294967295, %s4880_s16   ;;  %s3897_s18 = sadd.s32 4294967294, %s4880_s16   ;;  %s4880_s16 = sphi %s4967_s16, %s5809_s16   ;;  %s4876_s15 = sphi %s4965_s15, %s5808_s15   ;;  %s4872_s30 = sphi %s4963_s30, %s5807_s30   ;;  %s4868_s29 = sphi %s4961_s29, %s5806_s29  }
   0xa   : > { %s4986_s19 = sadd.s32 1, %s4880_s16   ;;  %s328_s20 = sadd.s32 1, %s4876_s15 }
   0xb   : > { %s325_s21 = ssub.s32 %s4880_s16, %s4986_s19  ;;  %p338_p0 = scmp.ne.s32.totalorder %s4876_s15, %s4872_s30 }
   0xc   : > { %p326_p1 = scmp.eq.s32.totalorder %s325_s21, 0  ;;  %p339_p2 = scmp.eq.s32.totalorder %s4982_s17, 1 }
   0xd   : > { %p344_p3 = scmp.ne.s32.totalorder %s4872_s30, %s4868_s29  ;;  %p345_p4 = scmp.eq.s32.totalorder %s3897_s18, 1 }
   0xe   : > { %s4997_s22 = scalar_select %p326_p1, %s4876_s15, %s328_s20  }
   0xf   : > { %p4999_p5 = por %p339_p2, %p338_p0  ;;  %p5003_p6 = por %p345_p4, %p344_p3 }
  0x10   : > { %p3899_p7 = scmp.ge.s32.totalorder %s4880_s16, 1  ;;  %p405_p8 = scmp.lt.s32.totalorder %s4880_s16, 3 }
  0x12   : > { %p406_p9 = pnand %p3899_p7, %p405_p8 }
  0x13   : > { %s5801_s0 = sld [smem:[#allocation5_spill]] (!%p406_p9)  ;;  %s443_s27 = sand.u32 (!%p406_p9), 1, %s4872_s30  }
  0x14   : > { %409 = sbr.rel (%p406_p9) target bundleno = 5213 (0x145d), region = 76  ;;  %s5802_s1 = sld [smem:[#allocation6_spill]] (!%p406_p9) }
  0x15   : > { %s5803_s3 = sld [smem:[#allocation8_spill]] (!%p406_p9)  ;;  %s3900_s28 = sshll.u32 (!%p406_p9), %s443_s27, 3 }
  0x16   : > { %s5804_s2 = sld [smem:[#allocation7_spill]] (!%p406_p9)  ;;  %s445_s18 = scalar_lea.vmem (!%p406_p9), [#allocation2], %s3900_s28 }
  0x17   : > { %s5805_s4 = sld [smem:[#allocation9_spill]] (!%p406_p9)  ;;  %s3850_s20 = sshll.u32 (!%p406_p9), %s445_s18, 4  ;;  %s3851_s20 = int_to_ptr.vmem [resolvable:$true] %s3850_s20 }
  0x19   : > { %v447_v0 = vld [vmem:[%s5801_s0] sm:$0xff]  ;;  %v448_v1 = vlaneseq  ;;  %v450_v2 = vstv %s4982_s17  ;;  %vm453_vm0 = vcmask 15360   ;;  %v4882_v10 = vmov 0.0   ;;  %s4130_s0 = sshll.u32 %s4982_s17, 7 }
  0x1a   : > { %4277 = vmatprep.subr.mxu0 %v4882_v10  ;;  %v473_v11 = vld [vmem:[%s5802_s1 + $0x18] sm:$0xff]  ;;  %4288 = vmatprep.subr.bf16.mxu1 %v4882_v10  ;;  %v472_v12 = vld [vmem:[%s5802_s1 + $0x10] sm:$0xff]  ;;  %v471_v13 = vld [vmem:[%s5802_s1 + $0x8] sm:$0xff]  ;;  %vm4883_vm2 = vmmov 0   ;;  %vm475_vm3 = vcmask 261120   ;;  %vm1326_vm5 = vcmask 64512   ;;  %s3848_s26 = scalar_lea.hbm %s5793_s14, %s4130_s0 }
  0x1b   : > { %v5014_v3 = vand.u32 127, %v448_v1  ;;  %4278 = vmatpush3.msra.mxu0 %v473_v11  ;;  %v470_v14 = vld [vmem:[%s5802_s1] sm:$0xff]  ;;  %4285 = vmatprep.mubr.msk.f32.mxu0 %vm4883_vm2, %v4882_v10  ;;  %v4714_v15 = vld [vmem:[%s5803_s3 + $0x8] sm:$0xff]   ;;  %v4715_v22 = vld [vmem:[%s5803_s3 + $0x18] sm:$0xff]   ;;  %vm1562_vm6 = vcmask 1043456   ;;  %vm2084_vm8 = vcmask 523264  }
  0x1c   : > { %4279 = vmatprep.subr.mxu0 %v4882_v10  ;;  %4292 = vmatprep.mubr.msk.bf16.mxu1 %vm4883_vm2, %v4882_v10  ;;  %v4716_v24 = vld [vmem:[%s5803_s3] sm:$0xff]   ;;  %v4717_v25 = vld [vmem:[%s5803_s3 + $0x10] sm:$0xff]   ;;  %v4718_v30 = vld [vmem:[%s5803_s3 + $0x28] sm:$0xff]   ;;  %s3837_s1 = scalar_lea.sflag [#allocation3], %s443_s27 }
  0x1d   : > { %vm451_vm1 = vcmp.eq.s32.totalorder %v5014_v3, %v450_v2  ;;  %4280 = vmatpush3.msra.mxu0 %v472_v12  ;;  %4289 = vmatpush3.bf16.msra.mxu1 %v4714_v15  ;;  %v474_v26 = vld [vmem:[%s5804_s2] sm:$0xff]  ;;  %v4719_v31 = vld [vmem:[%s5803_s3 + $0x38] sm:$0xff]   ;;  %v4721_v34 = vld [vmem:[%s5803_s3 + $0x30] sm:$0xff]   ;;  %s4820_s2 = scalar_lea.vmem %s3851_s20, 128 }
  0x1e   : > { %v452_v4 = vsel %vm451_vm1, %v447_v0, 0  ;;  %4281 = vmatprep.subr.mxu0 %v4882_v10  ;;  %4290 = vmatprep.subr.bf16.mxu1 %v4882_v10  ;;  %v4720_v33 = vld [vmem:[%s5803_s3 + $0x20] sm:$0xff]   ;;  %v4722_v35 = vld [vmem:[%s5803_s3 + $0x48] sm:$0xff]   ;;  %v4723_v36 = vld [vmem:[%s5803_s3 + $0x58] sm:$0xff]   ;;  %p4821_p10 = scmp.ne.s32.totalorder %s3851_s20, %s4820_s2 }
  0x1f   : > { %v454_v5 = vsel %vm453_vm0, %v452_v4, 0  ;;  %4282 = vmatpush3.msra.mxu0 %v471_v13  ;;  %v4724_v37 = vld [vmem:[%s5803_s3 + $0x40] sm:$0xff]   ;;  %v4725_v38 = vld [vmem:[%s5803_s3 + $0x50] sm:$0xff]   ;;  %v4726_v39 = vld [vmem:[%s5803_s3 + $0x68] sm:$0xff]  }
  0x20   : > { %v456_v6 = vshrl.u32 %v454_v5, 16  ;;  %v455_v7 = vand.u32 65535, %v454_v5  ;;  %4283 = vmatprep.subr.mxu0 %v4882_v10  ;;  %v4727_v40 = vld [vmem:[%s5803_s3 + $0x78] sm:$0xff]   ;;  %v4728_v41 = vld [vmem:[%s5803_s3 + $0x60] sm:$0xff]   ;;  %v4729_v42 = vld [vmem:[%s5803_s3 + $0x70] sm:$0xff]   ;;  %p4822_p11 = pnand %p4821_p10, %p4999_p5 }
  0x21   : > { %4284 = vmatpush3.msra.mxu0 %v470_v14  ;;  %4291 = vmatpush3.bf16.msra.mxu1 %v4716_v24  ;;  %v4730_v43 = vld [vmem:[%s5803_s3 + $0x88] sm:$0xff]   ;;  %v4731_v44 = vld [vmem:[%s5803_s3 + $0x98] sm:$0xff]   ;;  %v4732_v45 = vld [vmem:[%s5803_s3 + $0x80] sm:$0xff]  }
  0x22   : > { %v458_v8 = vcvt.s32.f32 %v456_v6  ;;  %v457_v9 = vcvt.s32.f32 %v455_v7  ;;  %4296 = vmatprep.subr.bf16.mxu0 %v4882_v10  ;;  %4304 = vmatprep.subr.bf16.mxu1 %v4882_v10  ;;  %v4733_v46 = vld [vmem:[%s5803_s3 + $0x90] sm:$0xff]   ;;  %v4734_v47 = vld [vmem:[%s5803_s3 + $0xa8] sm:$0xff]   ;;  %v4735_v48 = vld [vmem:[%s5803_s3 + $0xb8] sm:$0xff]   ;;  %p4823_p12 = pneg %p4822_p11 }
  0x23   : > { %v4736_v49 = vld [vmem:[%s5803_s3 + $0xa0] sm:$0xff]   ;;  %v4737_v50 = vld [vmem:[%s5803_s3 + $0xb0] sm:$0xff]  }
  0x24   : > { %461 = vadd.xlane.f32.xlu0 %v458_v8  ;;  %v3907_v5 = vld [vmem:[%s5805_s4 + $0x4] ss:$0 sm:$0xff]  ;;  %v3908_v6 = vld [vmem:[%s5805_s4 + $0x5] ss:$0 sm:$0xff]  ;;  %v3909_v24 = vld [vmem:[%s5805_s4 + $0x6] ss:$0 sm:$0xff] }
  0x28   : > { %459 = vadd.xlane.f32.xlu0 %v457_v9 }
  0xad   : > { %v462_v16 = vpop.xlane.xlu0 %461 }
  0xae   : > { %v464_v17 = vcvt.f32.s32 %v462_v16  ;;  %v3903_v16 = vld [vmem:[%s5805_s4] ss:$0 sm:$0xff] }
  0xb0   : > { %v465_v19 = vshll.u32 %v464_v17, 16  ;;  %v3904_v17 = vld [vmem:[%s5805_s4 + $0x1] ss:$0 sm:$0xff] }
  0xb1   : > { %v460_v18 = vpop.xlane.xlu0 %459 }
  0xb2   : > { %v463_v20 = vcvt.f32.s32 %v460_v18 }
  0xb4   : > { %v466_v21 = vadd.s32 %v465_v19, %v463_v20 }
  0xb6   : > { %vm467_vm4 = vcmp.eq.s32.totalorder %v466_v21, %v5014_v3 }
  0xb7   : > { %v3901_v23 = vsel %vm467_vm4, 1.0, %v4882_v10 }
  0xb8   : > { %4286 = vmatmul.mubr.msk.f32.vlgmr.msra.gmra.mxu0 %vm475_vm3, %v3901_v23 }
  0xb9   : > { %4297 = vmatpush3.bf16.msra.mxu0 %v4715_v22  ;;  %4300 = vmatprep.mubr.msk.bf16.mxu0 %vm4883_vm2, %v4882_v10 }
  0xba   : > { %4298 = vmatprep.subr.bf16.mxu0 %v4882_v10 }
  0xbd   : > { %4299 = vmatpush3.bf16.msra.mxu0 %v4717_v25  ;;  %v3910_v25 = vld [vmem:[%s5805_s4 + $0x7] ss:$0 sm:$0xff] }
  0xbe   : > { %4312 = vmatprep.subr.bf16.mxu0 %v4882_v10 }
 0x178   : > { %v545_v27 = vpop.f32.mrf.mxu0 }
 0x179   : > { %v5063_v28 = vadd.f32 %v545_v27, %v474_v26 }
 0x17a   : > { %v4287_v29 = vpop.f32.mrf.mxu0 }
 0x17b   : > { %v5073_v32 = vpack.c.bf16 %v5063_v28, %v5063_v28 }
 0x17d   : > { %4293 = vmatmul.mubr.msk.bf16.vlgmr.msra.gmra.mxu1 %vm475_vm3, %v5073_v32  ;;  %4301 = vmatmul.mubr.msk.bf16.vlgmr.msra.gmra.mxu0 %vm475_vm3, %v5073_v32 }
 0x17e   : > { %4305 = vmatpush3.bf16.msra.mxu1 %v4718_v30  ;;  %4313 = vmatpush3.bf16.msra.mxu0 %v4719_v31 }
 0x17f   : > { %4306 = vmatprep.subr.bf16.mxu1 %v4882_v10  ;;  %4314 = vmatprep.subr.bf16.mxu0 %v4882_v10 }
 0x180   : > { %4308 = vmatprep.mubr.msk.bf16.mxu1 %vm4883_vm2, %v4882_v10  ;;  %4316 = vmatprep.mubr.msk.bf16.mxu0 %vm4883_vm2, %v4882_v10 }
 0x182   : > { %4307 = vmatpush3.bf16.msra.mxu1 %v4720_v33  ;;  %4315 = vmatpush3.bf16.msra.mxu0 %v4721_v34 }
 0x183   : > { %4320 = vmatprep.subr.bf16.mxu1 %v4882_v10  ;;  %4328 = vmatprep.subr.bf16.mxu0 %v4882_v10 }
 0x185   : > { %4309 = vmatmul.mubr.msk.bf16.vlgmr.msra.gmra.mxu1 %vm475_vm3, %v5073_v32  ;;  %4317 = vmatmul.mubr.msk.bf16.vlgmr.msra.gmra.mxu0 %vm475_vm3, %v5073_v32 }
 0x186   : > { %4321 = vmatpush3.bf16.msra.mxu1 %v4722_v35  ;;  %4329 = vmatpush3.bf16.msra.mxu0 %v4723_v36 }
 0x187   : > { %4322 = vmatprep.subr.bf16.mxu1 %v4882_v10  ;;  %4330 = vmatprep.subr.bf16.mxu0 %v4882_v10 }
 0x188   : > { %4324 = vmatprep.mubr.msk.bf16.mxu1 %vm4883_vm2, %v4882_v10  ;;  %4332 = vmatprep.mubr.msk.bf16.mxu0 %vm4883_vm2, %v4882_v10 }
 0x18a   : > { %4323 = vmatpush3.bf16.msra.mxu1 %v4724_v37  ;;  %4331 = vmatpush3.bf16.msra.mxu0 %v4725_v38 }
 0x18b   : > { %4336 = vmatprep.subr.bf16.mxu1 %v4882_v10  ;;  %4344 = vmatprep.subr.bf16.mxu0 %v4882_v10 }
 0x18d   : > { %4325 = vmatmul.mubr.msk.bf16.vlgmr.msra.gmra.mxu1 %vm475_vm3, %v5073_v32  ;;  %4333 = vmatmul.mubr.msk.bf16.vlgmr.msra.gmra.mxu0 %vm475_vm3, %v5073_v32 }
 0x18e   : > { %4337 = vmatpush3.bf16.msra.mxu1 %v4726_v39  ;;  %4345 = vmatpush3.bf16.msra.mxu0 %v4727_v40  ;;  %v3905_v39 = vld [vmem:[%s5805_s4 + $0x2] ss:$0 sm:$0xff]  ;;  %v3906_v40 = vld [vmem:[%s5805_s4 + $0x3] ss:$0 sm:$0xff] }
 0x18f   : > { %4338 = vmatprep.subr.bf16.mxu1 %v4882_v10  ;;  %4346 = vmatprep.subr.bf16.mxu0 %v4882_v10 }
 0x190   : > { %4340 = vmatprep.mubr.msk.bf16.mxu1 %vm4883_vm2, %v4882_v10  ;;  %4348 = vmatprep.mubr.msk.bf16.mxu0 %vm4883_vm2, %v4882_v10 }
 0x192   : > { %4339 = vmatpush3.bf16.msra.mxu1 %v4728_v41  ;;  %4347 = vmatpush3.bf16.msra.mxu0 %v4729_v42 }
 0x193   : > { %4352 = vmatprep.subr.bf16.mxu1 %v4882_v10  ;;  %4360 = vmatprep.subr.bf16.mxu0 %v4882_v10 }
 0x195   : > { %4341 = vmatmul.mubr.msk.bf16.vlgmr.msra.gmra.mxu1 %vm475_vm3, %v5073_v32  ;;  %4349 = vmatmul.mubr.msk.bf16.vlgmr.msra.gmra.mxu0 %vm475_vm3, %v5073_v32 }
 0x196   : > { %4353 = vmatpush3.bf16.msra.mxu1 %v4730_v43  ;;  %4361 = vmatpush3.bf16.msra.mxu0 %v4731_v44 }
 0x197   : > { %4354 = vmatprep.subr.bf16.mxu1 %v4882_v10  ;;  %4362 = vmatprep.subr.bf16.mxu0 %v4882_v10 }
 0x198   : > { %4356 = vmatprep.mubr.msk.bf16.mxu1 %vm4883_vm2, %v4882_v10  ;;  %4364 = vmatprep.mubr.msk.bf16.mxu0 %vm4883_vm2, %v4882_v10 }
 0x19a   : > { %4355 = vmatpush3.bf16.msra.mxu1 %v4732_v45  ;;  %4363 = vmatpush3.bf16.msra.mxu0 %v4733_v46 }
 0x19b   : > { %4368 = vmatprep.subr.bf16.mxu1 %v4882_v10  ;;  %4376 = vmatprep.subr.bf16.mxu0 %v4882_v10 }
 0x19d   : > { %4357 = vmatmul.mubr.msk.bf16.vlgmr.msra.gmra.mxu1 %vm475_vm3, %v5073_v32  ;;  %4365 = vmatmul.mubr.msk.bf16.vlgmr.msra.gmra.mxu0 %vm475_vm3, %v5073_v32 }
 0x19e   : > { %4369 = vmatpush3.bf16.msra.mxu1 %v4734_v47  ;;  %4377 = vmatpush3.bf16.msra.mxu0 %v4735_v48  ;;  %v3911_v47 = vld [vmem:[%s5805_s4 + $0x8] ss:$0 sm:$0xff]  ;;  %v3912_v48 = vld [vmem:[%s5805_s4 + $0x9] ss:$0 sm:$0xff] }
 0x19f   : > { %4370 = vmatprep.subr.bf16.mxu1 %v4882_v10  ;;  %4378 = vmatprep.subr.bf16.mxu0 %v4882_v10 }
 0x1a0   : > { %4372 = vmatprep.mubr.msk.bf16.mxu1 %vm4883_vm2, %v4882_v10  ;;  %4380 = vmatprep.mubr.msk.bf16.mxu0 %vm4883_vm2, %v4882_v10 }
 0x1a2   : > { %4371 = vmatpush3.bf16.msra.mxu1 %v4736_v49  ;;  %4379 = vmatpush3.bf16.msra.mxu0 %v4737_v50 }
 0x1a3   : > { %4384 = vmatprep.subr.bf16.mxu1 %v4882_v10  ;;  %4390 = vmatprep.subr.bf16.mxu0 %v4882_v10 }
 0x1a5   : > { %4373 = vmatmul.mubr.msk.bf16.vlgmr.msra.gmra.mxu1 %vm475_vm3, %v5073_v32  ;;  %4381 = vmatmul.mubr.msk.bf16.vlgmr.msra.gmra.mxu0 %vm475_vm3, %v5073_v32 }
 0x1a6   : > { %4386 = vmatprep.mubr.msk.bf16.mxu1 %vm4883_vm2, %v4882_v10  ;;  %4392 = vmatprep.mubr.msk.bf16.mxu0 %vm4883_vm2, %v4882_v10 }
 0x23d   : > { %v736_v51 = vpop.f32.mrf.mxu1  ;;  %v788_v52 = vpop.f32.mrf.mxu0 }
 0x23e   : > { %v737_v26 = vadd.f32 %v3903_v16, %v736_v51  ;;  %v789_v27 = vadd.f32 %v3904_v17, %v788_v52 }
 0x23f   : > { %v4294_v53 = vpop.f32.mrf.mxu1  ;;  %v4302_v54 = vpop.f32.mrf.mxu0 }
 0x240   : > { %v1314_v35 = vpack.c.bf16 %v737_v26, %v737_v26  ;;  %v1315_v36 = vpack.c.bf16 %v789_v27, %v789_v27 }
 0x241   : > { %v739_v55 = vpop.f32.mrf.mxu1  ;;  %v791_v56 = vpop.f32.mrf.mxu0 }
 0x243   : > { %v4295_v57 = vpop.f32.mrf.mxu1  ;;  %v4303_v58 = vpop.f32.mrf.mxu0 }
 0x245   : > { %v840_v59 = vpop.f32.mrf.mxu1  ;;  %v892_v60 = vpop.f32.mrf.mxu0 }
 0x246   : > { %v841_v49 = vadd.f32 %v3905_v39, %v840_v59  ;;  %v893_v50 = vadd.f32 %v3906_v40, %v892_v60 }
 0x247   : > { %v4310_v61 = vpop.f32.mrf.mxu1  ;;  %v4318_v62 = vpop.f32.mrf.mxu0 }
 0x248   : > { %v1316_v57 = vpack.c.bf16 %v841_v49, %v841_v49  ;;  %v1317_v58 = vpack.c.bf16 %v893_v50, %v893_v50 }
 0x249   : > { %v843_v63 = vpop.f32.mrf.mxu1  ;;  %v895_v0 = vpop.f32.mrf.mxu0 }
 0x24b   : > { %v4311_v2 = vpop.f32.mrf.mxu1  ;;  %v4319_v4 = vpop.f32.mrf.mxu0 }
 0x24d   : > { %v944_v7 = vpop.f32.mrf.mxu1  ;;  %v996_v8 = vpop.f32.mrf.mxu0 }
 0x24e   : > { %v945_v9 = vadd.f32 %v3907_v5, %v944_v7  ;;  %v997_v11 = vadd.f32 %v3908_v6, %v996_v8 }
 0x24f   : > { %v4326_v12 = vpop.f32.mrf.mxu1  ;;  %v4334_v13 = vpop.f32.mrf.mxu0 }
 0x250   : > { %v1318_v14 = vpack.c.bf16 %v945_v9, %v945_v9  ;;  %v1319_v15 = vpack.c.bf16 %v997_v11, %v997_v11 }
 0x251   : > { %v947_v18 = vpop.f32.mrf.mxu1  ;;  %v999_v19 = vpop.f32.mrf.mxu0 }
 0x252   : > { %v1331_v20 = vsel %vm1326_vm5, %v1318_v14, 0  ;;  %v1377_v21 = vsel %vm1326_vm5, %v1319_v15, 0  ;;  %v5256_v14 = vshrl.u32 %v448_v1, 7  ;;  %v4884_v15 = vmov -1e+09  }
 0x253   : > { %v4327_v22 = vpop.f32.mrf.mxu1  ;;  %v4335_v23 = vpop.f32.mrf.mxu0  ;;  %4385 = vmatpush3.bf16.xpose.msra.mxu1 %v1331_v20  ;;  %4391 = vmatpush3.bf16.xpose.msra.mxu0 %v1377_v21 }
 0x254   : > { %4396 = vmatprep.subr.bf16.mxu1 %v4882_v10  ;;  %4402 = vmatprep.subr.bf16.mxu0 %v4882_v10  ;;  %vm551_vm7 = vcmp.le.s32.totalorder %v5014_v3, %v5256_v14 }
 0x255   : > { %v1048_v29 = vpop.f32.mrf.mxu1  ;;  %v1100_v30 = vpop.f32.mrf.mxu0  ;;  %v5260_v16 = vsel %vm551_vm7, 0.0, %v4884_v15 }
 0x256   : > { %v1049_v31 = vadd.f32 %v3909_v24, %v1048_v29  ;;  %v1101_v32 = vadd.f32 %v3910_v25, %v1100_v30 }
 0x257   : > { %v4342_v33 = vpop.f32.mrf.mxu1  ;;  %v4350_v34 = vpop.f32.mrf.mxu0 }
 0x258   : > { %v1320_v37 = vpack.c.bf16 %v1049_v31, %v1049_v31  ;;  %v1321_v38 = vpack.c.bf16 %v1101_v32, %v1101_v32 }
 0x259   : > { %v1051_v41 = vpop.f32.mrf.mxu1  ;;  %v1103_v42 = vpop.f32.mrf.mxu0 }
 0x25a   : > { %v1423_v43 = vsel %vm1326_vm5, %v1320_v37, 0  ;;  %v1469_v44 = vsel %vm1326_vm5, %v1321_v38, 0  ;;  %4387 = vmatmul.mubr.msk.bf16.vlgmr.msra.gmra.mxu1 %vm1326_vm5, %v1314_v35  ;;  %4393 = vmatmul.mubr.msk.bf16.vlgmr.msra.gmra.mxu0 %vm1326_vm5, %v1315_v36 }
 0x25b   : > { %v4343_v45 = vpop.f32.mrf.mxu1  ;;  %v4351_v46 = vpop.f32.mrf.mxu0  ;;  %4397 = vmatpush3.bf16.xpose.msra.mxu1 %v1423_v43  ;;  %4403 = vmatpush3.bf16.xpose.msra.mxu0 %v1469_v44 }
 0x25c   : > { %4398 = vmatprep.mubr.msk.bf16.mxu1 %vm4883_vm2, %v4882_v10  ;;  %4404 = vmatprep.mubr.msk.bf16.mxu0 %vm4883_vm2, %v4882_v10 }
 0x25d   : > { %v1152_v51 = vpop.f32.mrf.mxu1  ;;  %v1204_v52 = vpop.f32.mrf.mxu0  ;;  %4408 = vmatprep.subr.bf16.mxu1 %v4882_v10  ;;  %4414 = vmatprep.subr.bf16.mxu0 %v4882_v10 }
 0x25e   : > { %v1153_v53 = vadd.f32 %v3911_v47, %v1152_v51  ;;  %v1205_v54 = vadd.f32 %v3912_v48, %v1204_v52 }
 0x25f   : > { %v4358_v55 = vpop.f32.mrf.mxu1  ;;  %v4366_v56 = vpop.f32.mrf.mxu0 }
 0x260   : > { %v1322_v59 = vpack.c.bf16 %v1153_v53, %v1153_v53  ;;  %v1323_v60 = vpack.c.bf16 %v1205_v54, %v1205_v54 }
 0x261   : > { %v1155_v61 = vpop.f32.mrf.mxu1  ;;  %v1207_v62 = vpop.f32.mrf.mxu0 }
 0x262   : > { %v1564_v63 = vsel %vm1562_vm6, %v1322_v59, 0  ;;  %v1610_v0 = vsel %vm1562_vm6, %v1323_v60, 0  ;;  %4399 = vmatmul.mubr.msk.bf16.vlgmr.msra.gmra.mxu1 %vm1326_vm5, %v1316_v57  ;;  %4405 = vmatmul.mubr.msk.bf16.vlgmr.msra.gmra.mxu0 %vm1326_vm5, %v1317_v58  ;;  %v3913_v62 = vld [vmem:[%s5805_s4 + $0xa] ss:$0 sm:$0xff] }
 0x263   : > { %v4359_v2 = vpop.f32.mrf.mxu1  ;;  %v4367_v4 = vpop.f32.mrf.mxu0  ;;  %4409 = vmatpush3.bf16.msra.mxu1 %v1564_v63  ;;  %4415 = vmatpush3.bf16.msra.mxu0 %v1610_v0 }
 0x264   : > { %4410 = vmatprep.mubr.msk.bf16.mxu1 %vm4883_vm2, %v4882_v10  ;;  %4420 = vmatprep.subr.bf16.mxu1 %v4882_v10  ;;  %v3914_v4 = vld [vmem:[%s5805_s4 + $0xb] ss:$0 sm:$0xff] }
 0x265   : > { %v5248_v5 = vpop.f32.mrf.mxu1  ;;  %v5250_v6 = vpop.f32.mrf.mxu0  ;;  %4416 = vmatprep.mubr.msk.bf16.mxu0 %vm4883_vm2, %v4882_v10  ;;  %4426 = vmatprep.subr.bf16.mxu0 %v4882_v10 }
 0x266   : > { %v1257_v2 = vadd.f32 %v3913_v62, %v5248_v5 }
 0x267   : > { %v4374_v7 = vpop.f32.mrf.mxu1  ;;  %v4382_v8 = vpop.f32.mrf.mxu0 }
 0x268   : > { %v1324_v8 = vpack.c.bf16 %v1257_v2, %v1257_v2 }
 0x269   : > { %v1259_v9 = vpop.f32.mrf.mxu1  ;;  %v1311_v11 = vpop.f32.mrf.mxu0 }
 0x26a   : > { %v1309_v9 = vadd.f32 %v3914_v4, %v5250_v6  ;;  %v1656_v15 = vsel %vm1562_vm6, %v1324_v8, 0  ;;  %v1748_v6 = vld [vmem:[%s5784_s5] sm:$0xf] }
 0x26b   : > { %v4375_v12 = vpop.f32.mrf.mxu1  ;;  %v4383_v13 = vpop.f32.mrf.mxu0 }
 0x31a   : > { %v1367_v17 = vpop.f32.mrf.mxu1  ;;  %v1413_v18 = vpop.f32.mrf.mxu0 }
 0x31b   : > { %v1368_v19 = vadd.f32 %v1367_v17, %v5260_v16  ;;  %v1414_v22 = vadd.f32 %v1413_v18, %v5260_v16  ;;  %v1325_v17 = vpack.c.bf16 %v1309_v9, %v1309_v9 }
 0x31c   : > { %v4388_v20 = vpop.f32.mrf.mxu1  ;;  %v4394_v21 = vpop.f32.mrf.mxu0 }
 0x31d   : > { %v1511_v23 = vsel %vm1326_vm5, %v1368_v19, -inf  ;;  %v1514_v3 = vsel %vm1326_vm5, %v1414_v22, -inf  ;;  %v1702_v21 = vsel %vm1562_vm6, %v1325_v17, 0 }
 0x31e   : > { %1512 = vmax.xlane.f32.xlu1 %v1511_v23  ;;  %v1370_v24 = vpop.f32.mrf.mxu1  ;;  %v1416_v1 = vpop.f32.mrf.mxu0 }
 0x31f   : > { %v1756_v1 = vsel %vm1562_vm6, %v1748_v6, 0 }
 0x320   : > { %v4389_v25 = vpop.f32.mrf.mxu1  ;;  %v4395_v26 = vpop.f32.mrf.mxu0 }
 0x321   : > { %v1749_v26 = vld [vmem:[%s5784_s5 + $0x4] sm:$0xf] }
 0x322   : > { %v1459_v27 = vpop.f32.mrf.mxu1  ;;  %1515 = vmax.xlane.f32.xlu1 %v1514_v3  ;;  %v1505_v29 = vpop.f32.mrf.mxu0  ;;  %v1802_v3 = vsel %vm1562_vm6, %v1749_v26, 0  ;;  %v4741_v26 = vld [vmem:[%s5788_s9 + $0x10] sm:$0xff]  }
 0x323   : > { %v1460_v30 = vadd.f32 %v1459_v27, %v5260_v16  ;;  %v1506_v31 = vadd.f32 %v1505_v29, %v5260_v16  ;;  %v1750_v27 = vld [vmem:[%s5784_s5 + $0x8] sm:$0xf] }
 0x324   : > { %v4400_v32 = vpop.f32.mrf.mxu1  ;;  %v4406_v33 = vpop.f32.mrf.mxu0 }
 0x325   : > { %v1517_v34 = vsel %vm1326_vm5, %v1460_v30, -inf  ;;  %v1520_v35 = vsel %vm1326_vm5, %v1506_v31, -inf  ;;  %v1751_v33 = vld [vmem:[%s5784_s5 + $0xc] sm:$0xf] }
 0x326   : > { %1518 = vmax.xlane.f32.xlu0 %v1517_v34  ;;  %v1462_v36 = vpop.f32.mrf.mxu1  ;;  %1521 = vmax.xlane.f32.xlu1 %v1520_v35  ;;  %v1508_v37 = vpop.f32.mrf.mxu0 }
 0x327   : > { %v1894_v37 = vsel %vm1562_vm6, %v1751_v33, 0 }
 0x328   : > { %v4401_v38 = vpop.f32.mrf.mxu1  ;;  %v4407_v39 = vpop.f32.mrf.mxu0 }
 0x3a7   : > { %v1513_v40 = vpop.xlane.xlu1 %1512 }
 0x3a8   : > { %v1523_v41 = vsub.f32 %v1368_v19, %v1513_v40 }
 0x3aa   : > { %v1527_v42 = vmul.f32 1.442695, %v1523_v41 }
 0x3ab   : > { %v1516_v43 = vpop.xlane.xlu1 %1515 }
 0x3ac   : > { %4776 = vpow2.f32 %v1527_v42  ;;  %v1524_v44 = vsub.f32 %v1414_v22, %v1516_v43 }
 0x3ae   : > { %v1529_v45 = vmul.f32 1.442695, %v1524_v44 }
 0x3af   : > { %v1519_v46 = vpop.xlane.xlu0 %1518  ;;  %v1522_v47 = vpop.xlane.xlu1 %1521 }
 0x3b0   : > { %4778 = vpow2.f32 %v1529_v45  ;;  %v1525_v48 = vsub.f32 %v1460_v30, %v1519_v46  ;;  %v1526_v49 = vsub.f32 %v1506_v31, %v1522_v47  ;;  %v1848_v31 = vsel %vm1562_vm6, %v1750_v27, 0 }
 0x3b2   : > { %v1531_v50 = vmul.f32 1.442695, %v1525_v48  ;;  %v1533_v51 = vmul.f32 1.442695, %v1526_v49 }
 0x3b4   : > { %4780 = vpow2.f32 %v1531_v50 }
 0x3b5   : > { %4782 = vpow2.f32 %v1533_v51 }
 0x3b9   : > { %v4777_v52 = vpop.eup %4776 }
 0x3ba   : > { %v1535_v53 = vsel %vm1326_vm5, %v4777_v52, 0.0 }
 0x3bb   : > { %1536 = vadd.xlane.f32.xlu0 %v1535_v53 }
 0x3bd   : > { %v4779_v54 = vpop.eup %4778 }
 0x3be   : > { %v1538_v55 = vsel %vm1326_vm5, %v4779_v54, 0.0 }
 0x3bf   : > { %1539 = vadd.xlane.f32.xlu1 %v1538_v55 }
 0x3c1   : > { %v4781_v56 = vpop.eup %4780 }
 0x3c2   : > { %v4783_v57 = vpop.eup %4782  ;;  %v1541_v58 = vsel %vm1326_vm5, %v4781_v56, 0.0 }
 0x3c3   : > { %1542 = vadd.xlane.f32.xlu0 %v1541_v58  ;;  %v1544_v59 = vsel %vm1326_vm5, %v4783_v57, 0.0 }
 0x3c4   : > { %1545 = vadd.xlane.f32.xlu1 %v1544_v59 }
 0x444   : > { %v1537_v60 = vpop.xlane.xlu0 %1536 }
 0x445   : > { %4784 = vrcp.f32 %v1537_v60 }
 0x448   : > { %v1540_v61 = vpop.xlane.xlu1 %1539 }
 0x449   : > { %4786 = vrcp.f32 %v1540_v61 }
 0x44c   : > { %v1543_v63 = vpop.xlane.xlu0 %1542 }
 0x44d   : > { %4788 = vrcp.f32 %v1543_v63  ;;  %v1546_v0 = vpop.xlane.xlu1 %1545 }
 0x44e   : > { %4790 = vrcp.f32 %v1546_v0 }
 0x452   : > { %v4785_v7 = vpop.eup %4784 }
 0x453   : > { %v1551_v11 = vmul.f32 %v4785_v7, %v4777_v52 }
 0x455   : > { %v1555_v12 = vpack.c.bf16 %v1551_v11, %v1551_v11  ;;  %v3963_v11 = vld [vmem:[%s5785_s6] ss:$0 sm:$0xff] }
 0x456   : > { %v4787_v13 = vpop.eup %4786 }
 0x457   : > { %4411 = vmatmul.mubr.msk.bf16.vlgmr.msra.gmra.mxu1 %vm1326_vm5, %v1555_v12  ;;  %v1552_v18 = vmul.f32 %v4787_v13, %v4779_v54 }
 0x458   : > { %4421 = vmatpush3.bf16.msra.mxu1 %v1656_v15  ;;  %4422 = vmatprep.mubr.msk.bf16.mxu1 %vm4883_vm2, %v4882_v10 }
 0x459   : > { %v1556_v5 = vpack.c.bf16 %v1552_v18, %v1552_v18  ;;  %4432 = vmatprep.subr.bf16.mxu1 %v4882_v10 }
 0x45a   : > { %v4789_v19 = vpop.eup %4788 }
 0x45b   : > { %v4791_v20 = vpop.eup %4790  ;;  %4417 = vmatmul.mubr.msk.bf16.vlgmr.msra.gmra.mxu0 %vm1326_vm5, %v1556_v5  ;;  %v1553_v22 = vmul.f32 %v4789_v19, %v4781_v56 }
 0x45c   : > { %4427 = vmatpush3.bf16.msra.mxu0 %v1702_v21  ;;  %4428 = vmatprep.mubr.msk.bf16.mxu0 %vm4883_vm2, %v4882_v10  ;;  %v1554_v24 = vmul.f32 %v4791_v20, %v4783_v57 }
 0x45d   : > { %v1557_v23 = vpack.c.bf16 %v1553_v22, %v1553_v22  ;;  %4438 = vmatprep.subr.bf16.mxu0 %v4882_v10 }
 0x45e   : > { %v1558_v25 = vpack.c.bf16 %v1554_v24, %v1554_v24 }
 0x45f   : > { %4423 = vmatmul.mubr.msk.bf16.vlgmr.msra.gmra.mxu1 %vm1326_vm5, %v1557_v23 }
 0x460   : > { %4433 = vmatpush3.bf16.msra.mxu1 %v1756_v1  ;;  %4434 = vmatprep.mubr.msk.bf16.mxu1 %vm4883_vm2, %v4882_v10  ;;  %v4738_v1 = vld [vmem:[%s5786_s7 + $0x8] sm:$0xff]  }
 0x461   : > { %4444 = vmatprep.subr.bf16.mxu1 %v4882_v10 }
 0x463   : > { %4429 = vmatmul.mubr.msk.bf16.vlgmr.msra.gmra.mxu0 %vm1326_vm5, %v1558_v25  ;;  %v4739_v25 = vld [vmem:[%s5786_s7] sm:$0xff]  }
 0x464   : > { %4440 = vmatprep.mubr.msk.bf16.mxu0 %vm4883_vm2, %v4882_v10  ;;  %4439 = vmatpush3.bf16.msra.mxu0 %v1802_v3 }
 0x465   : > { %4450 = vmatprep.subr.bf16.mxu0 %v4882_v10 }
 0x517   : > { %v1600_v29 = vpop.f32.mrf.mxu1 }
 0x518   : > { %v1744_v30 = vpack.c.bf16 %v1600_v29, %v1600_v29 }
 0x519   : > { %v4412_v32 = vpop.f32.mrf.mxu1 }
 0x51a   : > { %4435 = vmatmul.mubr.msk.bf16.vlgmr.msra.gmra.mxu1 %vm1326_vm5, %v1744_v30  ;;  %v1968_v30 = vsub.s32 0, %v5256_v14  ;;  %v1973_v32 = vsub.s32 1, %v5256_v14 }
 0x51b   : > { %v1603_v34 = vpop.f32.mrf.mxu1  ;;  %v1646_v35 = vpop.f32.mrf.mxu0  ;;  %4445 = vmatpush3.bf16.msra.mxu1 %v1848_v31  ;;  %4446 = vmatprep.mubr.msk.bf16.mxu1 %vm4883_vm2, %v4882_v10  ;;  %v5360_v31 = vld [vmem:[%s5790_s11] sm:$0xf] }
 0x51c   : > { %v1745_v36 = vpack.c.bf16 %v1646_v35, %v1646_v35  ;;  %4456 = vmatprep.subr.bf16.mxu1 %v4882_v10  ;;  %v1969_v33 = vrot.slane %v5360_v31, %v1968_v30 }
 0x51d   : > { %v4413_v38 = vpop.f32.mrf.mxu1  ;;  %v4418_v39 = vpop.f32.mrf.mxu0 }
 0x51e   : > { %4441 = vmatmul.mubr.msk.bf16.vlgmr.msra.gmra.mxu0 %vm1326_vm5, %v1745_v36  ;;  %v1974_v36 = vrot.slane %v5360_v31, %v1973_v32 }
 0x51f   : > { %v1649_v40 = vpop.f32.mrf.mxu0  ;;  %v1692_v41 = vpop.f32.mrf.mxu1  ;;  %4451 = vmatpush3.bf16.msra.mxu0 %v1894_v37  ;;  %4452 = vmatprep.mubr.msk.bf16.mxu0 %vm4883_vm2, %v4882_v10 }
 0x520   : > { %v1746_v42 = vpack.c.bf16 %v1692_v41, %v1692_v41  ;;  %4464 = vmatprep.subr.bf16.mxu0 %v4882_v10  ;;  %v4742_v40 = vld [vmem:[%s5788_s9 + $0x8] sm:$0xff]   ;;  %v4743_v41 = vld [vmem:[%s5788_s9] sm:$0xff]  }
 0x521   : > { %v4419_v43 = vpop.f32.mrf.mxu0  ;;  %v4424_v44 = vpop.f32.mrf.mxu1 }
 0x522   : > { %4447 = vmatmul.mubr.msk.bf16.vlgmr.msra.gmra.mxu1 %vm1326_vm5, %v1746_v42  ;;  %v3964_v42 = vld [vmem:[%s5787_s8] ss:$0 sm:$0xff] }
 0x523   : > { %v1695_v45 = vpop.f32.mrf.mxu1  ;;  %v1738_v46 = vpop.f32.mrf.mxu0  ;;  %4460 = vmatprep.mubr.msk.bf16.mxu1 %vm4883_vm2, %v4882_v10  ;;  %4457 = vmatpush3.bf16.msra.mxu1 %v4738_v1  ;;  %v4753_v1 = vld [vmem:[%s5803_s3 + $0x128] sm:$0xff]  }
 0x524   : > { %v1747_v47 = vpack.c.bf16 %v1738_v46, %v1738_v46  ;;  %4458 = vmatprep.subr.bf16.mxu1 %v4882_v10 }
 0x525   : > { %v4425_v48 = vpop.f32.mrf.mxu1  ;;  %v4430_v49 = vpop.f32.mrf.mxu0 }
 0x526   : > { %4453 = vmatmul.mubr.msk.bf16.vlgmr.msra.gmra.mxu0 %vm1326_vm5, %v1747_v47 }
 0x527   : > { %v1741_v50 = vpop.f32.mrf.mxu0  ;;  %4472 = vmatprep.mubr.msk.bf16.mxu0 %vm4883_vm2, %v4882_v10  ;;  %4459 = vmatpush3.bf16.msra.mxu1 %v4739_v25  ;;  %v4754_v25 = vld [vmem:[%s5803_s3 + $0xf0] sm:$0xff]  }
 0x528   : > { %4476 = vmatprep.subr.bf16.mxu1 %v4882_v10  ;;  %v3968_v50 = vld [vmem:[%s5789_s10] ss:$0 sm:$0xff] }
 0x529   : > { %v4431_v51 = vpop.f32.mrf.mxu0 }
 0x5da   : > { %v1792_v52 = vpop.f32.mrf.mxu1 }
 0x5db   : > { %v1936_v61 = vsel %vm475_vm3, %v1792_v52, 0.0 }
 0x5dc   : > { %v4436_v53 = vpop.f32.mrf.mxu1 }
 0x5de   : > { %v1795_v54 = vpop.f32.mrf.mxu1  ;;  %v1838_v55 = vpop.f32.mrf.mxu0 }
 0x5df   : > { %v1937_v58 = vsel %vm475_vm3, %v1838_v55, 0.0 }
 0x5e0   : > { %v4437_v56 = vpop.f32.mrf.mxu1  ;;  %v4442_v57 = vpop.f32.mrf.mxu0  ;;  %v1938_v63 = vadd.f32 %v1937_v58, %v1936_v61 }
 0x5e2   : > { %v1841_v59 = vpop.f32.mrf.mxu0  ;;  %v1884_v60 = vpop.f32.mrf.mxu1 }
 0x5e3   : > { %v1939_v62 = vsel %vm475_vm3, %v1884_v60, 0.0 }
 0x5e4   : > { %v4443_v0 = vpop.f32.mrf.mxu0  ;;  %v4448_v2 = vpop.f32.mrf.mxu1  ;;  %v1940_v4 = vadd.f32 %v1939_v62, %v1938_v63  ;;  %v4744_v63 = vld [vmem:[%s5803_s3 + $0xc8] sm:$0xff]  }
 0x5e5   : > { %v4745_v0 = vld [vmem:[%s5803_s3 + $0xe8] sm:$0xff]   ;;  %v4746_v2 = vld [vmem:[%s5803_s3 + $0xc0] sm:$0xff]  }
 0x5e6   : > { %v1887_v7 = vpop.f32.mrf.mxu1  ;;  %v1930_v8 = vpop.f32.mrf.mxu0 }
 0x5e7   : > { %v1941_v9 = vsel %vm475_vm3, %v1930_v8, 0.0 }
 0x5e8   : > { %v1942_v12 = vadd.f32 %v1941_v9, %v1940_v4  ;;  %v4449_v13 = vpop.f32.mrf.mxu1  ;;  %v4454_v15 = vpop.f32.mrf.mxu0  ;;  %v4747_v4 = vld [vmem:[%s5803_s3 + $0xe0] sm:$0xff]  }
 0x5ea   : > { %v1950_v17 = vadd.f32 %v3963_v11, %v1942_v12  ;;  %v1933_v18 = vpop.f32.mrf.mxu0  ;;  %v2144_v11 = vsub.s32 2, %v5256_v14  ;;  %v2149_v12 = vsub.s32 3, %v5256_v14 }
 0x5ec   : > { %v4455_v5 = vpop.f32.mrf.mxu0  ;;  %v1951_v19 = vadd.f32 %v1950_v17, %v5063_v28  ;;  %v4740_v28 = vld [vmem:[%s5788_s9 + $0x18] sm:$0xff]   ;;  %v2145_v13 = vrot.slane %v5360_v31, %v2144_v11  ;;  %v2150_v17 = vrot.slane %v5360_v31, %v2149_v12 }
 0x5ed   : > { %4465 = vmatpush3.bf16.msra.mxu0 %v4740_v28  ;;  %v4755_v28 = vld [vmem:[%s5803_s3 + $0x120] sm:$0xff]   ;;  %v4760_v31 = vld [vmem:[%s5803_s3 + $0x138] sm:$0xff]  }
 0x5ee   : > { %v1952_v6 = vsel %vm475_vm3, %v1951_v19, 0.0  ;;  %4466 = vmatprep.subr.bf16.mxu0 %v4882_v10 }
 0x5ef   : > { %1953 = vadd.xlane.f32.xlu0 %v1952_v6  ;;  %v4748_v6 = vld [vmem:[%s5803_s3 + $0xd8] sm:$0xff]  }
 0x5f1   : > { %4467 = vmatpush3.bf16.msra.mxu0 %v4741_v26  ;;  %v4756_v26 = vld [vmem:[%s5803_s3 + $0x118] sm:$0xff]  }
 0x5f2   : > { %4468 = vmatprep.subr.bf16.mxu0 %v4882_v10 }
 0x5f5   : > { %4469 = vmatpush3.bf16.msra.mxu0 %v4742_v40 }
 0x5f6   : > { %4470 = vmatprep.subr.bf16.mxu0 %v4882_v10 }
 0x5f9   : > { %4471 = vmatpush3.bf16.msra.mxu0 %v4743_v41 }
 0x5fa   : > { %4492 = vmatprep.subr.bf16.mxu0 %v4882_v10 }
 0x678   : > { %v1954_v20 = vpop.xlane.xlu0 %1953 }
 0x679   : > { %v1956_v21 = vmul.f32 0.03125, %v1954_v20  ;;  %v4749_v20 = vld [vmem:[%s5803_s3 + $0x108] sm:$0xff]  }
 0x67b   : > { %v1957_v22 = vsub.f32 %v1951_v19, %v1956_v21 }
 0x67d   : > { %v1958_v23 = vmul.f32 %v1957_v22, %v1957_v22 }
 0x67f   : > { %v1959_v24 = vsel %vm475_vm3, %v1958_v23, 0.0  ;;  %v4751_v23 = vld [vmem:[%s5803_s3 + $0x100] sm:$0xff]  }
 0x680   : > { %1960 = vadd.xlane.f32.xlu1 %v1959_v24  ;;  %v4752_v24 = vld [vmem:[%s5803_s3 + $0xf8] sm:$0xff]  }
 0x709   : > { %v1961_v3 = vpop.xlane.xlu1 %1960 }
 0x70a   : > { %v1962_v27 = vmul.f32 0.03125, %v1961_v3  ;;  %v4757_v3 = vld [vmem:[%s5803_s3 + $0x148] sm:$0xff]  }
 0x70c   : > { %v1963_v29 = vadd.f32 1e-05, %v1962_v27  ;;  %v4758_v27 = vld [vmem:[%s5803_s3 + $0x110] sm:$0xff]  }
 0x70e   : > { %4792 = vrsqrt.f32 %v1963_v29  ;;  %v4759_v29 = vld [vmem:[%s5803_s3 + $0x140] sm:$0xff]  }
 0x71b   : > { %v4793_v34 = vpop.eup %4792 }
 0x71c   : > { %v1965_v35 = vmul.f32 %v4793_v34, %v1957_v22  ;;  %v4750_v22 = vld [vmem:[%s5803_s3 + $0xd0] sm:$0xff]  }
 0x71d   : > { %v4762_v34 = vld [vmem:[%s5803_s3 + $0x130] sm:$0xff]  }
 0x71e   : > { %v1970_v37 = vmul.f32 %v1969_v33, %v1965_v35  ;;  %v4761_v33 = vld [vmem:[%s5803_s3 + $0x168] sm:$0xff]   ;;  %v4763_v35 = vld [vmem:[%s5803_s3 + $0x160] sm:$0xff]  }
 0x720   : > { %v1975_v38 = vadd.f32 %v1974_v36, %v1970_v37  ;;  %v4764_v36 = vld [vmem:[%s5803_s3 + $0x158] sm:$0xff]   ;;  %v4765_v37 = vld [vmem:[%s5803_s3 + $0x150] sm:$0xff]  }
 0x722   : > { %v1976_v39 = vpack.c.bf16 %v1975_v38, %v1975_v38 }
 0x724   : > { %4461 = vmatmul.mubr.msk.bf16.vlgmr.msra.gmra.mxu1 %vm475_vm3, %v1976_v39  ;;  %v4767_v39 = vld [vmem:[%s5803_s3 + $0x170] sm:$0xff]  }
 0x725   : > { %4480 = vmatprep.mubr.msk.bf16.mxu1 %vm4883_vm2, %v4882_v10  ;;  %4477 = vmatpush3.bf16.msra.mxu1 %v4744_v63 }
 0x726   : > { %4478 = vmatprep.subr.bf16.mxu1 %v4882_v10 }
 0x729   : > { %4479 = vmatpush3.bf16.msra.mxu1 %v4746_v2 }
 0x72a   : > { %4484 = vmatprep.subr.bf16.mxu1 %v4882_v10 }
 0x7e4   : > { %v2037_v43 = vpop.f32.mrf.mxu1 }
 0x7e5   : > { %v2038_v44 = vadd.f32 %v3964_v42, %v2037_v43 }
 0x7e6   : > { %v4462_v45 = vpop.f32.mrf.mxu1 }
 0x7e7   : > { %v2043_v46 = vmax.f32 %v2038_v44, 0.0 }
 0x7e8   : > { %v2040_v47 = vpop.f32.mrf.mxu1 }
 0x7e9   : > { %v2044_v48 = vpack.c.bf16 %v2043_v46, %v2043_v46 }
 0x7ea   : > { %v4463_v49 = vpop.f32.mrf.mxu1 }
 0x7eb   : > { %4473 = vmatmul.mubr.msk.bf16.vlgmr.msra.gmra.mxu0 %vm2084_vm8, %v2044_v48  ;;  %v4039_v48 = vld [vmem:[%s5805_s4 + $0x10] ss:$0 sm:$0xff] }
 0x7ec   : > { %4496 = vmatprep.mubr.msk.bf16.mxu0 %vm4883_vm2, %v4882_v10  ;;  %4493 = vmatpush3.bf16.msra.mxu0 %v4745_v0 }
 0x7ed   : > { %4494 = vmatprep.subr.bf16.mxu0 %v4882_v10 }
 0x7f0   : > { %4495 = vmatpush3.bf16.msra.mxu0 %v4747_v4 }
 0x7f1   : > { %4508 = vmatprep.subr.bf16.mxu0 %v4882_v10 }
 0x8ab   : > { %v2122_v51 = vpop.f32.mrf.mxu0 }
 0x8ac   : > { %v2123_v52 = vadd.f32 %v3968_v50, %v2122_v51 }
 0x8ad   : > { %v4474_v53 = vpop.f32.mrf.mxu0 }
 0x8ae   : > { %v2128_v54 = vadd.f32 %v2123_v52, %v1975_v38  ;;  %v4766_v38 = vld [vmem:[%s5803_s3 + $0x178] sm:$0xff]   ;;  %s4885_s3 = smov [#allocation2]  }
 0x8af   : > { %v2125_v55 = vpop.f32.mrf.mxu0 }
 0x8b0   : > { %v2129_v56 = vsel %vm475_vm3, %v2128_v54, 0.0  ;;  %v4035_v55 = vld [vmem:[%s5805_s4 + $0xc] ss:$0 sm:$0xff] }
 0x8b1   : > { %2130 = vadd.xlane.f32.xlu0 %v2129_v56  ;;  %v4475_v57 = vpop.f32.mrf.mxu0 }
 0x93a   : > { %v2131_v58 = vpop.xlane.xlu0 %2130 }
 0x93b   : > { %v2132_v59 = vmul.f32 0.03125, %v2131_v58 }
 0x93d   : > { %v2133_v60 = vsub.f32 %v2128_v54, %v2132_v59 }
 0x93f   : > { %v2134_v61 = vmul.f32 %v2133_v60, %v2133_v60 }
 0x941   : > { %v2135_v62 = vsel %vm475_vm3, %v2134_v61, 0.0  ;;  %v4041_v61 = vld [vmem:[%s5805_s4 + $0x12] ss:$0 sm:$0xff] }
 0x942   : > { %2136 = vadd.xlane.f32.xlu1 %v2135_v62 }
 0x9cb   : > { %v2137_v7 = vpop.xlane.xlu1 %2136 }
 0x9cc   : > { %v2138_v8 = vmul.f32 0.03125, %v2137_v7 }
 0x9ce   : > { %v2139_v9 = vadd.f32 1e-05, %v2138_v8 }
 0x9d0   : > { %4794 = vrsqrt.f32 %v2139_v9 }
 0x9dd   : > { %v4795_v15 = vpop.eup %4794 }
 0x9de   : > { %v2141_v18 = vmul.f32 %v4795_v15, %v2133_v60 }
 0x9e0   : > { %v2146_v5 = vmul.f32 %v2145_v13, %v2141_v18  ;;  %v4037_v13 = vld [vmem:[%s5805_s4 + $0xe] ss:$0 sm:$0xff] }
 0x9e2   : > { %v5415_v19 = vadd.f32 %v2150_v17, %v2146_v5 }
 0x9e4   : > { %v5425_v21 = vpack.c.bf16 %v5415_v19, %v5415_v19 }
 0x9e6   : > { %4481 = vmatmul.mubr.msk.bf16.vlgmr.msra.gmra.mxu1 %vm475_vm3, %v5425_v21  ;;  %4497 = vmatmul.mubr.msk.bf16.vlgmr.msra.gmra.mxu0 %vm475_vm3, %v5425_v21 }
 0x9e7   : > { %4485 = vmatpush3.bf16.msra.mxu1 %v4748_v6  ;;  %4509 = vmatpush3.bf16.msra.mxu0 %v4749_v20  ;;  %v4040_v20 = vld [vmem:[%s5805_s4 + $0x11] ss:$0 sm:$0xff] }
 0x9e8   : > { %4486 = vmatprep.subr.bf16.mxu1 %v4882_v10  ;;  %4510 = vmatprep.subr.bf16.mxu0 %v4882_v10 }
 0x9e9   : > { %4488 = vmatprep.mubr.msk.bf16.mxu1 %vm4883_vm2, %v4882_v10  ;;  %4512 = vmatprep.mubr.msk.bf16.mxu0 %vm4883_vm2, %v4882_v10 }
 0x9eb   : > { %4487 = vmatpush3.bf16.msra.mxu1 %v4750_v22  ;;  %4511 = vmatpush3.bf16.msra.mxu0 %v4751_v23 }
 0x9ec   : > { %4500 = vmatprep.subr.bf16.mxu1 %v4882_v10  ;;  %4524 = vmatprep.subr.bf16.mxu0 %v4882_v10 }
 0x9ee   : > { %4489 = vmatmul.mubr.msk.bf16.vlgmr.msra.gmra.mxu1 %vm475_vm3, %v5425_v21  ;;  %4513 = vmatmul.mubr.msk.bf16.vlgmr.msra.gmra.mxu0 %vm475_vm3, %v5425_v21 }
 0x9ef   : > { %4501 = vmatpush3.bf16.msra.mxu1 %v4752_v24  ;;  %4525 = vmatpush3.bf16.msra.mxu0 %v4753_v1 }
 0x9f0   : > { %4502 = vmatprep.subr.bf16.mxu1 %v4882_v10  ;;  %4526 = vmatprep.subr.bf16.mxu0 %v4882_v10 }
 0x9f1   : > { %4504 = vmatprep.mubr.msk.bf16.mxu1 %vm4883_vm2, %v4882_v10  ;;  %4528 = vmatprep.mubr.msk.bf16.mxu0 %vm4883_vm2, %v4882_v10 }
 0x9f3   : > { %4503 = vmatpush3.bf16.msra.mxu1 %v4754_v25  ;;  %4527 = vmatpush3.bf16.msra.mxu0 %v4755_v28 }
 0x9f4   : > { %4516 = vmatprep.subr.bf16.mxu1 %v4882_v10  ;;  %4540 = vmatprep.subr.bf16.mxu0 %v4882_v10 }
 0x9f6   : > { %4505 = vmatmul.mubr.msk.bf16.vlgmr.msra.gmra.mxu1 %vm475_vm3, %v5425_v21  ;;  %4529 = vmatmul.mubr.msk.bf16.vlgmr.msra.gmra.mxu0 %vm475_vm3, %v5425_v21 }
 0x9f7   : > { %4517 = vmatpush3.bf16.msra.mxu1 %v4756_v26  ;;  %4541 = vmatpush3.bf16.msra.mxu0 %v4757_v3 }
 0x9f8   : > { %4518 = vmatprep.subr.bf16.mxu1 %v4882_v10  ;;  %4542 = vmatprep.subr.bf16.mxu0 %v4882_v10 }
 0x9f9   : > { %4520 = vmatprep.mubr.msk.bf16.mxu1 %vm4883_vm2, %v4882_v10  ;;  %4544 = vmatprep.mubr.msk.bf16.mxu0 %vm4883_vm2, %v4882_v10 }
 0x9fb   : > { %4519 = vmatpush3.bf16.msra.mxu1 %v4758_v27  ;;  %4543 = vmatpush3.bf16.msra.mxu0 %v4759_v29 }
 0x9fc   : > { %4532 = vmatprep.subr.bf16.mxu1 %v4882_v10  ;;  %4556 = vmatprep.subr.bf16.mxu0 %v4882_v10 }
 0x9fe   : > { %4521 = vmatmul.mubr.msk.bf16.vlgmr.msra.gmra.mxu1 %vm475_vm3, %v5425_v21  ;;  %4545 = vmatmul.mubr.msk.bf16.vlgmr.msra.gmra.mxu0 %vm475_vm3, %v5425_v21 }
 0x9ff   : > { %4533 = vmatpush3.bf16.msra.mxu1 %v4760_v31  ;;  %4557 = vmatpush3.bf16.msra.mxu0 %v4761_v33  ;;  %v4036_v31 = vld [vmem:[%s5805_s4 + $0xd] ss:$0 sm:$0xff] }
 0xa00   : > { %4534 = vmatprep.subr.bf16.mxu1 %v4882_v10  ;;  %4558 = vmatprep.subr.bf16.mxu0 %v4882_v10 }
 0xa01   : > { %4536 = vmatprep.mubr.msk.bf16.mxu1 %vm4883_vm2, %v4882_v10  ;;  %4560 = vmatprep.mubr.msk.bf16.mxu0 %vm4883_vm2, %v4882_v10 }
 0xa03   : > { %4535 = vmatpush3.bf16.msra.mxu1 %v4762_v34  ;;  %4559 = vmatpush3.bf16.msra.mxu0 %v4763_v35 }
 0xa04   : > { %4548 = vmatprep.subr.bf16.mxu1 %v4882_v10  ;;  %4572 = vmatprep.subr.bf16.mxu0 %v4882_v10 }
 0xa06   : > { %4537 = vmatmul.mubr.msk.bf16.vlgmr.msra.gmra.mxu1 %vm475_vm3, %v5425_v21  ;;  %4561 = vmatmul.mubr.msk.bf16.vlgmr.msra.gmra.mxu0 %vm475_vm3, %v5425_v21 }
 0xa07   : > { %4549 = vmatpush3.bf16.msra.mxu1 %v4764_v36  ;;  %4552 = vmatprep.mubr.msk.bf16.mxu1 %vm4883_vm2, %v4882_v10 }
 0xa08   : > { %4550 = vmatprep.subr.bf16.mxu1 %v4882_v10  ;;  %4574 = vmatprep.mubr.msk.bf16.mxu0 %vm4883_vm2, %v4882_v10 }
 0xa0b   : > { %4551 = vmatpush3.bf16.msra.mxu1 %v4765_v37 }
 0xa0c   : > { %4564 = vmatprep.subr.bf16.mxu1 %v4882_v10 }
 0xa0e   : > { %4553 = vmatmul.mubr.msk.bf16.vlgmr.msra.gmra.mxu1 %vm475_vm3, %v5425_v21 }
 0xa0f   : > { %4565 = vmatpush3.bf16.msra.mxu1 %v4766_v38  ;;  %4568 = vmatprep.mubr.msk.bf16.mxu1 %vm4883_vm2, %v4882_v10 }
 0xa10   : > { %4566 = vmatprep.subr.bf16.mxu1 %v4882_v10 }
 0xa13   : > { %4567 = vmatpush3.bf16.msra.mxu1 %v4767_v39  ;;  %v4042_v39 = vld [vmem:[%s5805_s4 + $0x13] ss:$0 sm:$0xff] }
 0xa14   : > { %4578 = vmatprep.subr.bf16.mxu1 %v4882_v10 }
 0xa16   : > { %4569 = vmatmul.mubr.msk.bf16.vlgmr.msra.gmra.mxu1 %vm475_vm3, %v5425_v21  ;;  %v4043_v21 = vld [vmem:[%s5805_s4 + $0x14] ss:$0 sm:$0xff] }
 0xa17   : > { %4580 = vmatprep.mubr.msk.bf16.mxu1 %vm4883_vm2, %v4882_v10 }
 0xaa6   : > { %v2338_v40 = vpop.f32.mrf.mxu1  ;;  %v2442_v41 = vpop.f32.mrf.mxu0 }
 0xaa7   : > { %v2339_v62 = vadd.f32 %v4035_v55, %v2338_v40  ;;  %v2443_v22 = vadd.f32 %v4037_v13, %v2442_v41 }
 0xaa8   : > { %v4482_v42 = vpop.f32.mrf.mxu1  ;;  %v4498_v43 = vpop.f32.mrf.mxu0 }
 0xaa9   : > { %v2916_v8 = vpack.c.bf16 %v2339_v62, %v2339_v62  ;;  %v2918_v3 = vpack.c.bf16 %v2443_v22, %v2443_v22 }
 0xaaa   : > { %v2341_v44 = vpop.f32.mrf.mxu1  ;;  %v2445_v45 = vpop.f32.mrf.mxu0 }
 0xaac   : > { %v4483_v46 = vpop.f32.mrf.mxu1  ;;  %v4499_v47 = vpop.f32.mrf.mxu0 }
 0xaae   : > { %v2390_v49 = vpop.f32.mrf.mxu1  ;;  %v2546_v50 = vpop.f32.mrf.mxu0 }
 0xaaf   : > { %v2547_v51 = vadd.f32 %v4039_v48, %v2546_v50  ;;  %v2391_v40 = vadd.f32 %v4036_v31, %v2390_v49  ;;  %v4038_v48 = vld [vmem:[%s5805_s4 + $0xf] ss:$0 sm:$0xff] }
 0xab0   : > { %v4490_v52 = vpop.f32.mrf.mxu1  ;;  %v4514_v53 = vpop.f32.mrf.mxu0 }
 0xab1   : > { %v2920_v54 = vpack.c.bf16 %v2547_v51, %v2547_v51  ;;  %v2917_v46 = vpack.c.bf16 %v2391_v40, %v2391_v40 }
 0xab2   : > { %v2393_v56 = vpop.f32.mrf.mxu1  ;;  %v2549_v57 = vpop.f32.mrf.mxu0 }
 0xab3   : > { %v2932_v58 = vsel %vm1326_vm5, %v2920_v54, 0  ;;  %v4044_v54 = vld [vmem:[%s5805_s4 + $0x15] ss:$0 sm:$0xff] }
 0xab4   : > { %v4491_v59 = vpop.f32.mrf.mxu1  ;;  %v4515_v60 = vpop.f32.mrf.mxu0  ;;  %4573 = vmatpush3.bf16.xpose.msra.mxu0 %v2932_v58 }
 0xab5   : > { %4584 = vmatprep.subr.bf16.mxu0 %v4882_v10 }
 0xab6   : > { %v2494_v63 = vpop.f32.mrf.mxu1  ;;  %v2650_v0 = vpop.f32.mrf.mxu0 }
 0xab7   : > { %v2651_v2 = vadd.f32 %v4041_v61, %v2650_v0  ;;  %v2495_v55 = vadd.f32 %v4038_v48, %v2494_v63 }
 0xab8   : > { %v4506_v4 = vpop.f32.mrf.mxu1  ;;  %v4530_v7 = vpop.f32.mrf.mxu0 }
 0xab9   : > { %v2922_v9 = vpack.c.bf16 %v2651_v2, %v2651_v2  ;;  %v2919_v59 = vpack.c.bf16 %v2495_v55, %v2495_v55 }
 0xaba   : > { %v2497_v15 = vpop.f32.mrf.mxu1  ;;  %v2653_v17 = vpop.f32.mrf.mxu0 }
 0xabb   : > { %v3024_v18 = vsel %vm1326_vm5, %v2922_v9, 0  ;;  %4575 = vmatmul.mubr.msk.bf16.vlgmr.msra.gmra.mxu0 %vm1326_vm5, %v2916_v8 }
 0xabc   : > { %v4507_v5 = vpop.f32.mrf.mxu1  ;;  %v4531_v6 = vpop.f32.mrf.mxu0  ;;  %4585 = vmatpush3.bf16.xpose.msra.mxu0 %v3024_v18  ;;  %4586 = vmatprep.mubr.msk.bf16.mxu0 %vm4883_vm2, %v4882_v10 }
 0xabd   : > { %4596 = vmatprep.subr.bf16.mxu0 %v4882_v10 }
 0xabe   : > { %v2598_v23 = vpop.f32.mrf.mxu1  ;;  %v2754_v24 = vpop.f32.mrf.mxu0 }
 0xabf   : > { %v2599_v1 = vadd.f32 %v4040_v20, %v2598_v23  ;;  %v2755_v25 = vadd.f32 %v4043_v21, %v2754_v24 }
 0xac0   : > { %v4522_v28 = vpop.f32.mrf.mxu1  ;;  %v4546_v26 = vpop.f32.mrf.mxu0 }
 0xac1   : > { %v2921_v27 = vpack.c.bf16 %v2599_v1, %v2599_v1  ;;  %v2924_v29 = vpack.c.bf16 %v2755_v25, %v2755_v25 }
 0xac2   : > { %v2601_v33 = vpop.f32.mrf.mxu1  ;;  %v2757_v34 = vpop.f32.mrf.mxu0 }
 0xac3   : > { %v2978_v35 = vsel %vm1326_vm5, %v2921_v27, 0  ;;  %v3164_v36 = vsel %vm1562_vm6, %v2924_v29, 0  ;;  %4587 = vmatmul.mubr.msk.bf16.vlgmr.msra.gmra.mxu0 %vm1326_vm5, %v2918_v3 }
 0xac4   : > { %v4523_v37 = vpop.f32.mrf.mxu1  ;;  %v4547_v38 = vpop.f32.mrf.mxu0  ;;  %4579 = vmatpush3.bf16.xpose.msra.mxu1 %v2978_v35  ;;  %4597 = vmatpush3.bf16.msra.mxu0 %v3164_v36 }
 0xac5   : > { %4590 = vmatprep.subr.bf16.mxu1 %v4882_v10  ;;  %4598 = vmatprep.mubr.msk.bf16.mxu0 %vm4883_vm2, %v4882_v10 }
 0xac6   : > { %v2702_v41 = vpop.f32.mrf.mxu1  ;;  %v5586_v42 = vpop.f32.mrf.mxu0  ;;  %4608 = vmatprep.subr.bf16.mxu0 %v4882_v10 }
 0xac7   : > { %v2703_v43 = vadd.f32 %v4042_v39, %v2702_v41 }
 0xac8   : > { %v4538_v44 = vpop.f32.mrf.mxu1  ;;  %v4562_v45 = vpop.f32.mrf.mxu0 }
 0xac9   : > { %v2923_v47 = vpack.c.bf16 %v2703_v43, %v2703_v43 }
 0xaca   : > { %v2705_v49 = vpop.f32.mrf.mxu1  ;;  %v2861_v50 = vpop.f32.mrf.mxu0 }
 0xacb   : > { %v3070_v51 = vsel %vm1326_vm5, %v2923_v47, 0  ;;  %4581 = vmatmul.mubr.msk.bf16.vlgmr.msra.gmra.mxu1 %vm1326_vm5, %v2917_v46 }
 0xacc   : > { %v4539_v52 = vpop.f32.mrf.mxu1  ;;  %v4563_v53 = vpop.f32.mrf.mxu0  ;;  %4591 = vmatpush3.bf16.xpose.msra.mxu1 %v3070_v51  ;;  %4592 = vmatprep.mubr.msk.bf16.mxu1 %vm4883_vm2, %v4882_v10 }
 0xacd   : > { %4602 = vmatprep.subr.bf16.mxu1 %v4882_v10 }
 0xace   : > { %v2806_v56 = vpop.f32.mrf.mxu1 }
 0xacf   : > { %v2807_v57 = vadd.f32 %v4044_v54, %v2806_v56 }
 0xad0   : > { %v4554_v58 = vpop.f32.mrf.mxu1 }
 0xad1   : > { %v2925_v60 = vpack.c.bf16 %v2807_v57, %v2807_v57  ;;  %v4045_v57 = vld [vmem:[%s5805_s4 + $0x16] ss:$0 sm:$0xff] }
 0xad2   : > { %v2809_v61 = vpop.f32.mrf.mxu1 }
 0xad3   : > { %v3210_v62 = vsel %vm1562_vm6, %v2925_v60, 0  ;;  %4593 = vmatmul.mubr.msk.bf16.vlgmr.msra.gmra.mxu1 %vm1326_vm5, %v2919_v59  ;;  %v2859_v59 = vadd.f32 %v4045_v57, %v5586_v42  ;;  %v4046_v42 = vld [vmem:[%s5805_s4 + $0x17] ss:$0 sm:$0xff]  ;;  %s4824_s4 = sshll.u32 %s4885_s3, 4  ;;  %s4825_s4 = int_to_ptr.vmem [resolvable:$false] %s4824_s4 }
 0xad4   : > { %v4555_v0 = vpop.f32.mrf.mxu1  ;;  %4603 = vmatpush3.bf16.msra.mxu1 %v3210_v62  ;;  %4604 = vmatprep.mubr.msk.bf16.mxu1 %vm4883_vm2, %v4882_v10  ;;  %s4826_s17 = scalar_lea.vmem %s4825_s4, 256  ;;  %p4827_p13 = scmp.lt.s32.totalorder %s3851_s20, %s4825_s4 }
 0xad5   : > { %4614 = vmatprep.subr.bf16.mxu1 %v4882_v10  ;;  %v2926_v61 = vpack.c.bf16 %v2859_v59, %v2859_v59  ;;  %p4828_p0 = scmp.lt.s32.totalorder %s4826_s17, %s4820_s2 }
 0xad6   : > { %v5605_v63 = vpop.f32.mrf.mxu1 }
 0xad7   : > { %p4829_p1 = por %p4828_p0, %p4827_p13 }
 0xad8   : > { %v4570_v2 = vpop.f32.mrf.mxu1 }
 0xad9   : > { %p4830_p2 = pnand %p4829_p1, %p4823_p12 }
 0xada   : > { %v2913_v4 = vpop.f32.mrf.mxu1 }
 0xadb   : > { %v3256_v4 = vsel %vm1562_vm6, %v2926_v61, 0 }
 0xadc   : > { %v4571_v7 = vpop.f32.mrf.mxu1 }
 0xb7b   : > { %v2968_v8 = vpop.f32.mrf.mxu0 }
 0xb7c   : > { %v2969_v9 = vadd.f32 %v2968_v8, %v5260_v16 }
 0xb7d   : > { %v4576_v13 = vpop.f32.mrf.mxu0 }
 0xb7e   : > { %v3112_v15 = vsel %vm1326_vm5, %v2969_v9, -inf }
 0xb7f   : > { %3113 = vmax.xlane.f32.xlu0 %v3112_v15  ;;  %v2971_v17 = vpop.f32.mrf.mxu0  ;;  %v2911_v15 = vadd.f32 %v4046_v42, %v5605_v63 }
 0xb81   : > { %v4577_v18 = vpop.f32.mrf.mxu0 }
 0xb82   : > { %v2927_v18 = vpack.c.bf16 %v2911_v15, %v2911_v15 }
 0xb83   : > { %v3060_v5 = vpop.f32.mrf.mxu0 }
 0xb84   : > { %v3061_v6 = vadd.f32 %v3060_v5, %v5260_v16 }
 0xb85   : > { %v4588_v20 = vpop.f32.mrf.mxu0 }
 0xb86   : > { %v3118_v21 = vsel %vm1326_vm5, %v3061_v6, -inf  ;;  %v3302_v20 = vsel %vm1562_vm6, %v2927_v18, 0 }
 0xb87   : > { %3119 = vmax.xlane.f32.xlu0 %v3118_v21  ;;  %v3063_v22 = vpop.f32.mrf.mxu0 }
 0xb89   : > { %v4589_v23 = vpop.f32.mrf.mxu0 }
 0xb8a   : > { %v4091_v23 = vld [vmem:[%s5784_s5 + $0x10] sm:$0xf] }
 0xb8b   : > { %v3014_v24 = vpop.f32.mrf.mxu1 }
 0xb8c   : > { %v3015_v1 = vadd.f32 %v3014_v24, %v5260_v16  ;;  %v3357_v24 = vsel %vm1562_vm6, %v4091_v23, 0 }
 0xb8d   : > { %v4582_v25 = vpop.f32.mrf.mxu1 }
 0xb8e   : > { %v3115_v28 = vsel %vm1326_vm5, %v3015_v1, -inf }
 0xb8f   : > { %3116 = vmax.xlane.f32.xlu1 %v3115_v28  ;;  %v3017_v26 = vpop.f32.mrf.mxu1  ;;  %v4093_v28 = vld [vmem:[%s5784_s5 + $0x18] sm:$0xf] }
 0xb91   : > { %v4583_v3 = vpop.f32.mrf.mxu1 }
 0xb93   : > { %v3106_v27 = vpop.f32.mrf.mxu1 }
 0xb94   : > { %v3107_v29 = vadd.f32 %v3106_v27, %v5260_v16  ;;  %v3449_v27 = vsel %vm1562_vm6, %v4093_v28, 0  ;;  %v4769_v28 = vld [vmem:[%s5786_s7 + $0x10] sm:$0xff]  }
 0xb95   : > { %v4594_v31 = vpop.f32.mrf.mxu1 }
 0xb96   : > { %v3121_v33 = vsel %vm1326_vm5, %v3107_v29, -inf }
 0xb97   : > { %3122 = vmax.xlane.f32.xlu1 %v3121_v33  ;;  %v3109_v34 = vpop.f32.mrf.mxu1 }
 0xb99   : > { %v4595_v35 = vpop.f32.mrf.mxu1 }
 0xc08   : > { %v3114_v36 = vpop.xlane.xlu0 %3113 }
 0xc09   : > { %v3124_v37 = vsub.f32 %v2969_v9, %v3114_v36 }
 0xc0b   : > { %v3128_v38 = vmul.f32 1.442695, %v3124_v37 }
 0xc0d   : > { %4796 = vpow2.f32 %v3128_v38 }
 0xc10   : > { %v3120_v39 = vpop.xlane.xlu0 %3119 }
 0xc11   : > { %v3126_v40 = vsub.f32 %v3061_v6, %v3120_v39  ;;  %v4094_v39 = vld [vmem:[%s5784_s5 + $0x1c] sm:$0xf] }
 0xc13   : > { %v3132_v41 = vmul.f32 1.442695, %v3126_v40 }
 0xc15   : > { %4798 = vpow2.f32 %v3132_v41 }
 0xc18   : > { %v3117_v43 = vpop.xlane.xlu1 %3116 }
 0xc19   : > { %v3125_v44 = vsub.f32 %v3015_v1, %v3117_v43  ;;  %v4092_v1 = vld [vmem:[%s5784_s5 + $0x14] sm:$0xf]  ;;  %v3495_v43 = vsel %vm1562_vm6, %v4094_v39, 0 }
 0xc1a   : > { %v4797_v45 = vpop.eup %4796  ;;  %v3403_v25 = vsel %vm1562_vm6, %v4092_v1, 0 }
 0xc1b   : > { %v3130_v46 = vmul.f32 1.442695, %v3125_v44  ;;  %v3136_v16 = vsel %vm1326_vm5, %v4797_v45, 0.0 }
 0xc1c   : > { %3137 = vadd.xlane.f32.xlu0 %v3136_v16 }
 0xc1d   : > { %4800 = vpow2.f32 %v3130_v46 }
 0xc20   : > { %v3123_v47 = vpop.xlane.xlu1 %3122 }
 0xc21   : > { %v3127_v48 = vsub.f32 %v3107_v29, %v3123_v47 }
 0xc22   : > { %v4799_v49 = vpop.eup %4798 }
 0xc23   : > { %v3134_v50 = vmul.f32 1.442695, %v3127_v48  ;;  %v3142_v51 = vsel %vm1326_vm5, %v4799_v49, 0.0 }
 0xc24   : > { %3143 = vadd.xlane.f32.xlu0 %v3142_v51 }
 0xc25   : > { %4802 = vpow2.f32 %v3134_v50 }
 0xc2a   : > { %v4801_v52 = vpop.eup %4800 }
 0xc2b   : > { %v3139_v53 = vsel %vm1326_vm5, %v4801_v52, 0.0 }
 0xc2c   : > { %3140 = vadd.xlane.f32.xlu1 %v3139_v53 }
 0xc32   : > { %v4803_v54 = vpop.eup %4802 }
 0xc33   : > { %v3145_v55 = vsel %vm1326_vm5, %v4803_v54, 0.0 }
 0xc34   : > { %3146 = vadd.xlane.f32.xlu1 %v3145_v55 }
 0xca5   : > { %v3138_v56 = vpop.xlane.xlu0 %3137 }
 0xca6   : > { %4804 = vrcp.f32 %v3138_v56 }
 0xcad   : > { %v3144_v58 = vpop.xlane.xlu0 %3143 }
 0xcae   : > { %4806 = vrcp.f32 %v3144_v58 }
 0xcb3   : > { %v4805_v60 = vpop.eup %4804 }
 0xcb4   : > { %v3152_v62 = vmul.f32 %v4805_v60, %v4797_v45 }
 0xcb5   : > { %v3141_v0 = vpop.xlane.xlu1 %3140 }
 0xcb6   : > { %4808 = vrcp.f32 %v3141_v0  ;;  %v3156_v2 = vpack.c.bf16 %v3152_v62, %v3152_v62 }
 0xcb8   : > { %4599 = vmatmul.mubr.msk.bf16.vlgmr.msra.gmra.mxu0 %vm1326_vm5, %v3156_v2 }
 0xcb9   : > { %4609 = vmatpush3.bf16.msra.mxu0 %v3256_v4  ;;  %4610 = vmatprep.mubr.msk.bf16.mxu0 %vm4883_vm2, %v4882_v10 }
 0xcba   : > { %4620 = vmatprep.subr.bf16.mxu0 %v4882_v10 }
 0xcbb   : > { %v4807_v7 = vpop.eup %4806 }
 0xcbc   : > { %v3154_v8 = vmul.f32 %v4807_v7, %v4799_v49 }
 0xcbd   : > { %v3147_v9 = vpop.xlane.xlu1 %3146 }
 0xcbe   : > { %4810 = vrcp.f32 %v3147_v9  ;;  %v3158_v13 = vpack.c.bf16 %v3154_v8, %v3154_v8 }
 0xcc0   : > { %4611 = vmatmul.mubr.msk.bf16.vlgmr.msra.gmra.mxu0 %vm1326_vm5, %v3158_v13  ;;  %v4100_v13 = vld [vmem:[%s5785_s6 + $0x1] ss:$0 sm:$0xff] }
 0xcc1   : > { %4622 = vmatprep.mubr.msk.bf16.mxu0 %vm4883_vm2, %v4882_v10  ;;  %4621 = vmatpush3.bf16.msra.mxu0 %v3357_v24 }
 0xcc2   : > { %4632 = vmatprep.subr.bf16.mxu0 %v4882_v10 }
 0xcc3   : > { %v4809_v17 = vpop.eup %4808 }
 0xcc4   : > { %v3153_v5 = vmul.f32 %v4809_v17, %v4801_v52 }
 0xcc6   : > { %v3157_v6 = vpack.c.bf16 %v3153_v5, %v3153_v5 }
 0xcc8   : > { %4605 = vmatmul.mubr.msk.bf16.vlgmr.msra.gmra.mxu1 %vm1326_vm5, %v3157_v6 }
 0xcc9   : > { %4615 = vmatpush3.bf16.msra.mxu1 %v3302_v20  ;;  %4616 = vmatprep.mubr.msk.bf16.mxu1 %vm4883_vm2, %v4882_v10 }
 0xcca   : > { %4626 = vmatprep.subr.bf16.mxu1 %v4882_v10 }
 0xccb   : > { %v4811_v63 = vpop.eup %4810 }
 0xccc   : > { %v3155_v21 = vmul.f32 %v4811_v63, %v4803_v54 }
 0xcce   : > { %v3159_v22 = vpack.c.bf16 %v3155_v21, %v3155_v21 }
 0xcd0   : > { %4617 = vmatmul.mubr.msk.bf16.vlgmr.msra.gmra.mxu1 %vm1326_vm5, %v3159_v22 }
 0xcd1   : > { %4628 = vmatprep.mubr.msk.bf16.mxu1 %vm4883_vm2, %v4882_v10  ;;  %4627 = vmatpush3.bf16.msra.mxu1 %v3403_v25  ;;  %v4768_v25 = vld [vmem:[%s5786_s7 + $0x18] sm:$0xff]  }
 0xcd2   : > { %4638 = vmatprep.subr.bf16.mxu1 %v4882_v10 }
 0xd78   : > { %v3200_v26 = vpop.f32.mrf.mxu0 }
 0xd79   : > { %v3344_v3 = vpack.c.bf16 %v3200_v26, %v3200_v26  ;;  %v4771_v26 = vld [vmem:[%s5788_s9 + $0x30] sm:$0xff]  }
 0xd7a   : > { %v4600_v29 = vpop.f32.mrf.mxu0 }
 0xd7b   : > { %4623 = vmatmul.mubr.msk.bf16.vlgmr.msra.gmra.mxu0 %vm1326_vm5, %v3344_v3 }
 0xd7c   : > { %v3203_v31 = vpop.f32.mrf.mxu0  ;;  %4633 = vmatpush3.bf16.msra.mxu0 %v3449_v27  ;;  %4634 = vmatprep.mubr.msk.bf16.mxu0 %vm4883_vm2, %v4882_v10 }
 0xd7d   : > { %4644 = vmatprep.subr.bf16.mxu0 %v4882_v10  ;;  %v3974_v31 = vld [vmem:[%s5790_s11 + $0x4] sm:$0xf] }
 0xd7e   : > { %v4601_v33 = vpop.f32.mrf.mxu0 }
 0xd7f   : > { %v3570_v33 = vrot.slane %v3974_v31, %v1968_v30  ;;  %v4773_v30 = vld [vmem:[%s5788_s9 + $0x20] sm:$0xff]  }
 0xd80   : > { %v3292_v34 = vpop.f32.mrf.mxu0 }
 0xd81   : > { %v3346_v35 = vpack.c.bf16 %v3292_v34, %v3292_v34 }
 0xd82   : > { %v4612_v36 = vpop.f32.mrf.mxu0 }
 0xd83   : > { %4635 = vmatmul.mubr.msk.bf16.vlgmr.msra.gmra.mxu0 %vm1326_vm5, %v3346_v35  ;;  %v3575_v36 = vrot.slane %v3974_v31, %v1973_v32  ;;  %v4106_v32 = vld [vmem:[%s5787_s8 + $0x1] ss:$0 sm:$0xff] }
 0xd84   : > { %v3295_v37 = vpop.f32.mrf.mxu0  ;;  %4648 = vmatprep.mubr.msk.bf16.mxu0 %vm4883_vm2, %v4882_v10  ;;  %4645 = vmatpush3.bf16.msra.mxu0 %v4768_v25 }
 0xd85   : > { %4646 = vmatprep.subr.bf16.mxu0 %v4882_v10 }
 0xd86   : > { %v4613_v38 = vpop.f32.mrf.mxu0 }
 0xd88   : > { %v3246_v40 = vpop.f32.mrf.mxu1  ;;  %4647 = vmatpush3.bf16.msra.mxu0 %v4769_v28 }
 0xd89   : > { %v3345_v41 = vpack.c.bf16 %v3246_v40, %v3246_v40  ;;  %4664 = vmatprep.subr.bf16.mxu0 %v4882_v10  ;;  %v4772_v40 = vld [vmem:[%s5788_s9 + $0x28] sm:$0xff]  }
 0xd8a   : > { %v4606_v44 = vpop.f32.mrf.mxu1 }
 0xd8b   : > { %4629 = vmatmul.mubr.msk.bf16.vlgmr.msra.gmra.mxu1 %vm1326_vm5, %v3345_v41 }
 0xd8c   : > { %v3249_v45 = vpop.f32.mrf.mxu1  ;;  %4639 = vmatpush3.bf16.msra.mxu1 %v3495_v43  ;;  %4640 = vmatprep.mubr.msk.bf16.mxu1 %vm4883_vm2, %v4882_v10 }
 0xd8d   : > { %4652 = vmatprep.subr.bf16.mxu1 %v4882_v10 }
 0xd8e   : > { %v4607_v46 = vpop.f32.mrf.mxu1 }
 0xd90   : > { %v3338_v16 = vpop.f32.mrf.mxu1 }
 0xd91   : > { %v3347_v47 = vpack.c.bf16 %v3338_v16, %v3338_v16 }
 0xd92   : > { %v4618_v48 = vpop.f32.mrf.mxu1 }
 0xd93   : > { %4641 = vmatmul.mubr.msk.bf16.vlgmr.msra.gmra.mxu1 %vm1326_vm5, %v3347_v47  ;;  %v4119_v48 = vld [vmem:[%s5789_s10 + $0x1] ss:$0 sm:$0xff] }
 0xd94   : > { %v3341_v49 = vpop.f32.mrf.mxu1  ;;  %4660 = vmatprep.mubr.msk.bf16.mxu1 %vm4883_vm2, %v4882_v10 }
 0xd96   : > { %v4619_v50 = vpop.f32.mrf.mxu1 }
 0xe3b   : > { %v3393_v51 = vpop.f32.mrf.mxu0 }
 0xe3c   : > { %v3537_v62 = vsel %vm475_vm3, %v3393_v51, 0.0 }
 0xe3d   : > { %v4624_v52 = vpop.f32.mrf.mxu0 }
 0xe3f   : > { %v3396_v53 = vpop.f32.mrf.mxu0 }
 0xe41   : > { %v4625_v54 = vpop.f32.mrf.mxu0 }
 0xe43   : > { %v3485_v55 = vpop.f32.mrf.mxu0 }
 0xe44   : > { %v3540_v7 = vsel %vm475_vm3, %v3485_v55, 0.0 }
 0xe45   : > { %v4636_v56 = vpop.f32.mrf.mxu0 }
 0xe47   : > { %v3488_v57 = vpop.f32.mrf.mxu0 }
 0xe49   : > { %v4637_v58 = vpop.f32.mrf.mxu0 }
 0xe4b   : > { %v3439_v59 = vpop.f32.mrf.mxu1 }
 0xe4c   : > { %v3538_v60 = vsel %vm475_vm3, %v3439_v59, 0.0 }
 0xe4d   : > { %v4630_v61 = vpop.f32.mrf.mxu1  ;;  %v3539_v0 = vadd.f32 %v3538_v60, %v3537_v62  ;;  %v4775_v62 = vld [vmem:[%s5791_s12] sm:$0xff]  }
 0xe4e   : > { %v4774_v61 = vld [vmem:[%s5791_s12 + $0x8] sm:$0xff]  }
 0xe4f   : > { %v3442_v2 = vpop.f32.mrf.mxu1  ;;  %v3541_v42 = vadd.f32 %v3540_v7, %v3539_v0  ;;  %v3749_v7 = vrot.slane %v3974_v31, %v2144_v11 }
 0xe51   : > { %v4631_v4 = vpop.f32.mrf.mxu1 }
 0xe53   : > { %v3531_v8 = vpop.f32.mrf.mxu1 }
 0xe54   : > { %v3542_v9 = vsel %vm475_vm3, %v3531_v8, 0.0 }
 0xe55   : > { %v3543_v15 = vadd.f32 %v3542_v9, %v3541_v42  ;;  %v4642_v17 = vpop.f32.mrf.mxu1  ;;  %v3754_v9 = vrot.slane %v3974_v31, %v2149_v12 }
 0xe57   : > { %v3552_v18 = vadd.f32 %v4100_v13, %v3543_v15  ;;  %v3534_v5 = vpop.f32.mrf.mxu1 }
 0xe59   : > { %v4643_v6 = vpop.f32.mrf.mxu1  ;;  %v3553_v20 = vadd.f32 %v3552_v18, %v5415_v19  ;;  %v4770_v19 = vld [vmem:[%s5788_s9 + $0x38] sm:$0xff]  }
 0xe5a   : > { %4653 = vmatpush3.bf16.msra.mxu1 %v4770_v19 }
 0xe5b   : > { %v3554_v63 = vsel %vm475_vm3, %v3553_v20, 0.0  ;;  %4654 = vmatprep.subr.bf16.mxu1 %v4882_v10 }
 0xe5c   : > { %3555 = vadd.xlane.f32.xlu0 %v3554_v63 }
 0xe5e   : > { %4655 = vmatpush3.bf16.msra.mxu1 %v4771_v26 }
 0xe5f   : > { %4656 = vmatprep.subr.bf16.mxu1 %v4882_v10 }
 0xe62   : > { %4657 = vmatpush3.bf16.msra.mxu1 %v4772_v40 }
 0xe63   : > { %4658 = vmatprep.subr.bf16.mxu1 %v4882_v10 }
 0xe66   : > { %4659 = vmatpush3.bf16.msra.mxu1 %v4773_v30 }
 0xee5   : > { %v3556_v21 = vpop.xlane.xlu0 %3555 }
 0xee6   : > { %v3557_v22 = vmul.f32 0.03125, %v3556_v21 }
 0xee8   : > { %v3558_v23 = vsub.f32 %v3553_v20, %v3557_v22 }
 0xeea   : > { %v3559_v24 = vmul.f32 %v3558_v23, %v3558_v23 }
 0xeec   : > { %v3560_v1 = vsel %vm475_vm3, %v3559_v24, 0.0 }
 0xeed   : > { %3561 = vadd.xlane.f32.xlu1 %v3560_v1 }
 0xf76   : > { %v3562_v3 = vpop.xlane.xlu1 %3561 }
 0xf77   : > { %v3563_v27 = vmul.f32 0.03125, %v3562_v3 }
 0xf79   : > { %v3564_v29 = vadd.f32 1e-05, %v3563_v27 }
 0xf7b   : > { %4812 = vrsqrt.f32 %v3564_v29 }
 0xf88   : > { %v4813_v34 = vpop.eup %4812 }
 0xf89   : > { %v3566_v35 = vmul.f32 %v4813_v34, %v3558_v23 }
 0xf8b   : > { %v3571_v37 = vmul.f32 %v3570_v33, %v3566_v35 }
 0xf8d   : > { %v3576_v38 = vadd.f32 %v3575_v36, %v3571_v37 }
 0xf8f   : > { %v3577_v39 = vpack.c.bf16 %v3576_v38, %v3576_v38 }
 0xf91   : > { %4649 = vmatmul.mubr.msk.bf16.vlgmr.msra.gmra.mxu0 %vm475_vm3, %v3577_v39 }
 0xf92   : > { %4668 = vmatprep.mubr.msk.bf16.mxu0 %vm4883_vm2, %v4882_v10  ;;  %4665 = vmatpush3.bf16.msra.mxu0 %v4774_v61 }
 0xf93   : > { %4666 = vmatprep.subr.bf16.mxu0 %v4882_v10  ;;  %v4125_v10 = vld [vmem:[%s5792_s13] ss:$0 sm:$0xff] }
 0xf96   : > { %4667 = vmatpush3.bf16.msra.mxu0 %v4775_v62 }
0x1051   : > { %v3640_v41 = vpop.f32.mrf.mxu0 }
0x1052   : > { %v3641_v43 = vadd.f32 %v4106_v32, %v3640_v41 }
0x1053   : > { %v4650_v44 = vpop.f32.mrf.mxu0 }
0x1054   : > { %v3646_v45 = vmax.f32 %v3641_v43, 0.0 }
0x1055   : > { %v3643_v46 = vpop.f32.mrf.mxu0 }
0x1056   : > { %v3647_v16 = vpack.c.bf16 %v3646_v45, %v3646_v45 }
0x1057   : > { %v4651_v47 = vpop.f32.mrf.mxu0 }
0x1058   : > { %4661 = vmatmul.mubr.msk.bf16.vlgmr.msra.gmra.mxu1 %vm2084_vm8, %v3647_v16 }
0x1118   : > { %v3726_v49 = vpop.f32.mrf.mxu1 }
0x1119   : > { %v3727_v50 = vadd.f32 %v4119_v48, %v3726_v49 }
0x111a   : > { %v4662_v51 = vpop.f32.mrf.mxu1 }
0x111b   : > { %v3732_v52 = vadd.f32 %v3727_v50, %v3576_v38 }
0x111c   : > { %v3729_v53 = vpop.f32.mrf.mxu1 }
0x111d   : > { %v3733_v54 = vsel %vm475_vm3, %v3732_v52, 0.0 }
0x111e   : > { %3734 = vadd.xlane.f32.xlu0 %v3733_v54  ;;  %v4663_v55 = vpop.f32.mrf.mxu1 }
0x11a7   : > { %v3735_v56 = vpop.xlane.xlu0 %3734 }
0x11a8   : > { %v3736_v57 = vmul.f32 0.03125, %v3735_v56 }
0x11aa   : > { %v3737_v58 = vsub.f32 %v3732_v52, %v3736_v57 }
0x11ac   : > { %v3738_v59 = vmul.f32 %v3737_v58, %v3737_v58 }
0x11ae   : > { %v3739_v60 = vsel %vm475_vm3, %v3738_v59, 0.0 }
0x11af   : > { %3740 = vadd.xlane.f32.xlu1 %v3739_v60 }
0x1238   : > { %v3741_v0 = vpop.xlane.xlu1 %3740 }
0x1239   : > { %v3742_v2 = vmul.f32 0.03125, %v3741_v0 }
0x123b   : > { %v3743_v4 = vadd.f32 1e-05, %v3742_v2 }
0x123d   : > { %4814 = vrsqrt.f32 %v3743_v4 }
0x124a   : > { %v4815_v8 = vpop.eup %4814 }
0x124b   : > { %v3745_v42 = vmul.f32 %v4815_v8, %v3737_v58 }
0x124d   : > { %v3750_v13 = vmul.f32 %v3749_v7, %v3745_v42 }
0x124f   : > { %v3755_v15 = vadd.f32 %v3754_v9, %v3750_v13 }
0x1251   : > { %v3756_v17 = vpack.c.bf16 %v3755_v15, %v3755_v15 }
0x1253   : > { %4669 = vmatmul.mubr.msk.bf16.vlgmr.msra.gmra.mxu0 %vm475_vm3, %v3756_v17 }
0x1313   : > { %v3817_v18 = vpop.f32.mrf.mxu0 }
0x1314   : > { %v3818_v5 = vadd.f32 %v4125_v10, %v3817_v18 }
0x1315   : > { %v4670_v6 = vpop.f32.mrf.mxu0 }
0x1316   : > { %v3823_v11 = vsel %vm475_vm3, %v3818_v5, -inf }
0x1317   : > { %3824 = vmax.xlane.f32.xlu0 %v3823_v11  ;;  %v3820_v20 = vpop.f32.mrf.mxu0 }
0x1319   : > { %v4671_v14 = vpop.f32.mrf.mxu0 }
0x13a0   : > { %v3825_v12 = vpop.xlane.xlu0 %3824 }
0x13a1   : > { %v3826_v63 = vsub.f32 %v3818_v5, %v3825_v12 }
0x13a3   : > { %v3827_v21 = vmul.f32 1.442695, %v3826_v63 }
0x13a5   : > { %4816 = vpow2.f32 %v3827_v21 }
0x13b2   : > { %v4817_v22 = vpop.eup %4816 }
0x13b3   : > { %v3829_v23 = vsel %vm475_vm3, %v4817_v22, 0.0 }
0x13b4   : > { %3830 = vadd.xlane.f32.xlu1 %v3829_v23 }
0x143d   : > { %v3831_v24 = vpop.xlane.xlu1 %3830 }
0x143e   : > { %4818 = vlog2.f32 %v3831_v24 }
0x144b   : > { %v4819_v1 = vpop.eup %4818 }
0x144c   : > { %v3833_v25 = vmul.f32 0.6931472, %v4819_v1 }
0x144e   : > { %v3834_v28 = vsub.f32 %v3826_v63, %v3833_v25 }
0x1450   : > { %3835 = vst.msk [vmem:[%s445_s18] sm:$0xff] %vm475_vm3, %v3834_v28 }
0x1451   : > { %4833 = shalt.err (!%p4830_p2)
}
0x1452   : > { %s4834_s28 = scalar_lea.hbm %s3848_s26, 128  ;;  %s4838_s18 = scalar_lea.hbm %s5793_s14, 256 }
0x1453   : > { %p4835_p3 = scmp.ne.s32.totalorder %s3848_s26, %s4834_s28  ;;  %p4839_p8 = scmp.lt.s32.totalorder %s3848_s26, %s5793_s14 }
0x1454   : > { %p4840_p9 = scmp.lt.s32.totalorder %s4838_s18, %s4834_s28 }
0x1455   : > { %p4836_p4 = pnand %p4835_p3, %p4999_p5 }
0x1456   : > { %p4841_p10 = por %p4840_p9, %p4839_p8 }
0x1457   : > { %p4837_p7 = pneg %p4836_p4 }
0x1459   : > { %p4842_p11 = pnand %p4841_p10, %p4837_p7 }
0x145b   : > { %4845 = shalt.err (!%p4842_p11)
}
0x145c   : > { %4672 = dma.vmem_to_hbm [thread:$0]  (%p4999_p5), %s3851_s20, 128, %s3848_s26, %s3837_s1  }
0x145d PF: > { %p4678_p12 = scmp.ge.s32.totalorder %s4880_s16, 2  ;;  %s3862_s2 = sand.u32 1, %s4868_s29  }
0x145e   : > { %s3863_s3 = scalar_lea.sflag [#allocation3], %s3862_s2 }
0x145f   : > { %p4675_p13 = pnand %p4678_p12, %p5003_p6 }
0x1461   : > { %p4676_p0 = pneg %p4675_p13 }
0x1463   : > { %4863 = dma.done.wait (%p4676_p0), %s3863_s3, 128  }
0x1464   : > { %4865 = vsyncadd (%p4676_p0), %s3863_s3, 4294967168  ;;  %p24_p1 = scmp.ge.s32.totalorder %s4986_s19, 4   ;;  %s5806_s29 = smov %s4872_s30 }
0x1465   : > { %s5807_s30 = smov %s4876_s15  ;;  %s5808_s15 = smov %s4997_s22 }
0x1466   : > { %s5809_s16 = smov %s4986_s19  ;;  %26 = sbr.rel (!%p24_p1) target bundleno = 9 (0x9), region = 117 }
0x146b   :  { %3868 = vsyncpa [#allocation3], 1 }
0x146c   :  { %3870 = vsyncpa [#allocation3 + $0x1], 1 }

</bundles_post_ra>
